<compile_context>
chip_gen: v7x
topology: tpu7x:2x2x1
jax: 0.10.0
libtpu: 0.0.40
codegen_flags: <defaults>
</compile_context>

<pallas_src>
import jax
import jax.numpy as jnp
from jax.experimental import pallas as pl
from jax.experimental.pallas import tpu as pltpu


# ------------------------------ kernel helpers ------------------------------

def _conv1d_same_relu(x, w2d, b):
    """Conv1d(kernel=3, stride=1, padding=1) + ReLU, channels-last.

    x: (B, L, Cin); w2d: (3*Cin, Cout) rows ordered tap(-1),tap(0),tap(+1) per
    Cin block; b: (1, Cout). One im2col matmul with M = B*L (batch collapsed).
    """
    B, L, Cin = x.shape
    cout = w2d.shape[1]
    zero = jnp.zeros((B, 1, Cin), x.dtype)
    xp = jnp.concatenate([zero, x, zero], axis=1)                 # (B, L+2, Cin)
    cols = jnp.concatenate(
        [xp[:, 0:L, :], xp[:, 1:L + 1, :], xp[:, 2:L + 2, :]], axis=-1)  # (B, L, 3Cin)
    y = jnp.dot(cols.reshape(B * L, 3 * Cin), w2d,
                preferred_element_type=jnp.float32) + b
    return jnp.maximum(y, 0.0).reshape(B, L, cout)


def _maxpool1d_2(x):
    # MaxPool1d(kernel_size=2, stride=2) along L.
    # Kept as reshape + size-2 reduce (proven to lower); strided sublane
    # slicing (x[:, 0::2, :]) avoided for Mosaic-lowering safety.
    B, L, C = x.shape
    return jnp.max(x.reshape(B, L // 2, 2, C), axis=2)


# ------------------------------- Pallas kernel ------------------------------

def fused_critic_kernel(md_ref, port_ref, act_ref,
                        c1w_ref, c1b_ref, c2w_ref, c2b_ref, c3w_ref, c3b_ref,
                        pw_ref, pb_ref, aw_ref, ab_ref,
                        f1wc_ref, f1wp_ref, f1wa_ref, f1b_ref,
                        f2w_ref, f2b_ref, qw_ref, qb_ref,
                        out_ref):
    x = md_ref[...]                                              # (B, W, F)
    x = _conv1d_same_relu(x, c1w_ref[...], c1b_ref[...])         # (B, W,   64)
    x = _maxpool1d_2(x)                                          # (B, W/2, 64)
    x = _conv1d_same_relu(x, c2w_ref[...], c2b_ref[...])         # (B, W/2, 128)
    x = _maxpool1d_2(x)                                          # (B, W/4, 128)
    x = _conv1d_same_relu(x, c3w_ref[...], c3b_ref[...])         # (B, W/4, 256)

    B, L4, C = x.shape
    # (l, c)-ordered flatten; the torch channel-major permutation is folded
    # into f1wc host-side -> no in-kernel transpose.
    flat = x.reshape(B, L4 * C)                                  # (B, L4*256)

    p = jnp.maximum(jnp.dot(port_ref[...], pw_ref[...],
                            preferred_element_type=jnp.float32) + pb_ref[...], 0.0)
    a = jnp.maximum(jnp.dot(act_ref[...], aw_ref[...],
                            preferred_element_type=jnp.float32) + ab_ref[...], 0.0)

    # fc1 as three row-sliced dots summed (no concat of [flat, p, a]).
    h = (jnp.dot(flat, f1wc_ref[...], preferred_element_type=jnp.float32)
         + jnp.dot(p, f1wp_ref[...], preferred_element_type=jnp.float32)
         + jnp.dot(a, f1wa_ref[...], preferred_element_type=jnp.float32)
         + f1b_ref[...])
    h = jnp.maximum(h, 0.0)
    h = jnp.maximum(jnp.dot(h, f2w_ref[...],
                            preferred_element_type=jnp.float32) + f2b_ref[...], 0.0)
    out_ref[...] = jnp.dot(h, qw_ref[...],
                           preferred_element_type=jnp.float32) + qb_ref[...]   # (B, 2)


def cnn_critic_forward(market_data, portfolio_state, action, fused_params):
    """Twin-Q forward; both branches evaluated inside ONE pallas_call.
    Returns (q1, q2), each (B, 1), matching CNNCriticNetwork.forward."""
    B = market_data.shape[0]
    order = ("c1w", "c1b", "c2w", "c2b", "c3w", "c3b",
             "pw", "pb", "aw", "ab",
             "f1wc", "f1wp", "f1wa", "f1b",
             "f2w", "f2b", "qw", "qb")
    args = (market_data, portfolio_state, action) + tuple(fused_params[k] for k in order)
    vmem = lambda: pl.BlockSpec(memory_space=pltpu.MemorySpace.VMEM)
    # TODO(synk): for production batch sizes, add a batch grid
    # (BlockSpec((TB, W, F), lambda i: (i, 0, 0)) on the data inputs, weights
    # pinned to block 0) so VMEM stays bounded (budget v7x's 64 MiB) and DMA
    # pipelines behind compute.
    out = pl.pallas_call(
        fused_critic_kernel,
        out_shape=jax.ShapeDtypeStruct((B, 2), jnp.float32),
        in_specs=[vmem() for _ in args],
        out_specs=vmem(),
    )(*args)
    return out[:, 0:1], out[:, 1:2]


# ------------------------- parameter init (per branch) ----------------------

def _linear_init(key, fan_in, fan_out):
    k1, k2 = jax.random.split(key)
    bound = 1.0 / float(fan_in) ** 0.5
    w = jax.random.uniform(k1, (fan_in, fan_out), jnp.float32, -bound, bound)
    b = jax.random.uniform(k2, (fan_out,), jnp.float32, -bound, bound)
    return w, b


def _conv_init(key, cin, cout, ksize=3):
    k1, k2 = jax.random.split(key)
    fan_in = cin * ksize
    bound = 1.0 / float(fan_in) ** 0.5
    w = jax.random.uniform(k1, (ksize, cin, cout), jnp.float32, -bound, bound)
    b = jax.random.uniform(k2, (cout,), jnp.float32, -bound, bound)
    return w, b


def init_branch_params(key, feature_dim, window_size, action_dim, hidden_dim):
    assert window_size % 4 == 0, "window_size must be a multiple of 4 (two MaxPool1d(2))"
    keys = jax.random.split(key, 8)
    conv_output_size = 128 * (window_size // 4)
    h4 = hidden_dim // 4
    c1w, c1b = _conv_init(keys[0], feature_dim, 32)
    c2w, c2b = _conv_init(keys[1], 32, 64)
    c3w, c3b = _conv_init(keys[2], 64, 128)
    pw, pb = _linear_init(keys[3], 2, h4)
    aw, ab = _linear_init(keys[4], action_dim, h4)
    f1w, f1b = _linear_init(keys[5], conv_output_size + 2 * h4, hidden_dim)
    f2w, f2b = _linear_init(keys[6], hidden_dim, hidden_dim)
    qw, qb = _linear_init(keys[7], hidden_dim, 1)
    return dict(c1w=c1w, c1b=c1b, c2w=c2w, c2b=c2b, c3w=c3w, c3b=c3b,
                pw=pw, pb=pb, aw=aw, ab=ab,
                f1w=f1w, f1b=f1b, f2w=f2w, f2b=f2b, qw=qw, qb=qb)


# --------------------- host-side fusion of the two branches -----------------

def fuse_branch_params(p1, p2, window_size, hidden_dim):
    """Stack the two Q-branches into one set of weights (block-diagonal where
    the branches have independent inputs). Also folds PyTorch's channel-major
    flatten permutation into fc1's conv rows. All done once, host side.
    (To load trained torch weights: conv (Cout,Cin,K)->transpose to (K,Cin,Cout),
    linear (out,in)->transpose to (in,out), then call this function.)"""
    L4 = window_size // 4
    h = hidden_dim
    h4 = h // 4
    conv_out = 128 * L4
    f32 = jnp.float32

    def stack_conv_shared_input(w1, w2, b1, b2):
        # same input for both branches -> stack along Cout; reshape to im2col 2D
        w = jnp.concatenate([w1, w2], axis=-1)                    # (3, Cin, 2Cout)
        k, cin, cout2 = w.shape
        return w.reshape(k * cin, cout2), jnp.concatenate([b1, b2])[None, :]

    def stack_conv_blockdiag(w1, w2, b1, b2):
        k, cin, cout = w1.shape
        z = jnp.zeros((k, cin, cout), f32)
        w = jnp.concatenate(
            [jnp.concatenate([w1, z], axis=-1),
             jnp.concatenate([z, w2], axis=-1)], axis=1)          # (3, 2Cin, 2Cout)
        return w.reshape(k * 2 * cin, 2 * cout), jnp.concatenate([b1, b2])[None, :]

    def stack_linear_shared_input(w1, w2, b1, b2):
        return jnp.concatenate([w1, w2], axis=-1), jnp.concatenate([b1, b2])[None, :]

    def stack_linear_blockdiag(w1, w2, b1, b2):
        din, dout = w1.shape
        z = jnp.zeros((din, dout), f32)
        w = jnp.concatenate(
            [jnp.concatenate([w1, z], axis=-1),
             jnp.concatenate([z, w2], axis=-1)], axis=0)          # (2din, 2dout)
        return w, jnp.concatenate([b1, b2])[None, :]

    c1w, c1b = stack_conv_shared_input(p1["c1w"], p2["c1w"], p1["c1b"], p2["c1b"])
    c2w, c2b = stack_conv_blockdiag(p1["c2w"], p2["c2w"], p1["c2b"], p2["c2b"])
    c3w, c3b = stack_conv_blockdiag(p1["c3w"], p2["c3w"], p1["c3b"], p2["c3b"])
    pw, pb = stack_linear_shared_input(p1["pw"], p2["pw"], p1["pb"], p2["pb"])
    aw, ab = stack_linear_shared_input(p1["aw"], p2["aw"], p1["ab"], p2["ab"])

    # fc1: split each branch's weight rows into conv-flat / portfolio / action.
    def split_f1(w):
        return w[:conv_out], w[conv_out:conv_out + h4], w[conv_out + h4:]

    w1c, w1p, w1a = split_f1(p1["f1w"])
    w2c, w2p, w2a = split_f1(p2["f1w"])

    def perm_flatten(wc):
        # rows ordered (c*L4 + l) [torch channel-major .view] -> (l, c) order
        return wc.reshape(128, L4, h).transpose(1, 0, 2)          # (L4, 128, h)

    w1c = perm_flatten(w1c)
    w2c = perm_flatten(w2c)
    zc = jnp.zeros((L4, 128, h), f32)
    f1wc = jnp.concatenate(
        [jnp.concatenate([w1c, zc], axis=-1),      # fused channels   0..127 -> q1 cols
         jnp.concatenate([zc, w2c], axis=-1)],     # fused channels 128..255 -> q2 cols
        axis=1).reshape(L4 * 256, 2 * h)

    zero_h = jnp.zeros((h,), f32)
    f1wp, _ = stack_linear_blockdiag(w1p, w2p, zero_h, zero_h)
    f1wa, _ = stack_linear_blockdiag(w1a, w2a, zero_h, zero_h)
    f1b = jnp.concatenate([p1["f1b"], p2["f1b"]])[None, :]

    f2w, f2b = stack_linear_blockdiag(p1["f2w"], p2["f2w"], p1["f2b"], p2["f2b"])
    qw, qb = stack_linear_blockdiag(p1["qw"], p2["qw"], p1["qb"], p2["qb"])

    return dict(c1w=c1w, c1b=c1b, c2w=c2w, c2b=c2b, c3w=c3w, c3b=c3b,
                pw=pw, pb=pb, aw=aw, ab=ab,
                f1wc=f1wc, f1wp=f1wp, f1wa=f1wa, f1b=f1b,
                f2w=f2w, f2b=f2b, qw=qw, qb=qb)


# ----------------------- pure-JAX reference (unfused) -----------------------

def _ref_conv1d_same_relu(x, w, b):
    B, L, Cin = x.shape
    zero = jnp.zeros((B, 1, Cin), x.dtype)
    xm1 = jnp.concatenate([zero, x[:, :-1, :]], axis=1)
    xp1 = jnp.concatenate([x[:, 1:, :], zero], axis=1)
    y = (jnp.einsum('blf,fc->blc', xm1, w[0])
         + jnp.einsum('blf,fc->blc', x, w[1])
         + jnp.einsum('blf,fc->blc', xp1, w[2]) + b[None, None, :])
    return jnp.maximum(y, 0.0)


def _ref_pool(x):
    B, L, C = x.shape
    return jnp.max(x.reshape(B, L // 2, 2, C), axis=2)


def _ref_branch(md, port, act, p):
    x = _ref_conv1d_same_relu(md, p["c1w"], p["c1b"])
    x = _ref_pool(x)
    x = _ref_conv1d_same_relu(x, p["c2w"], p["c2b"])
    x = _ref_pool(x)
    x = _ref_conv1d_same_relu(x, p["c3w"], p["c3b"])
    B, L4, C = x.shape
    flat = jnp.transpose(x, (0, 2, 1)).reshape(B, C * L4)        # torch .view order
    pp = jnp.maximum(port @ p["pw"] + p["pb"], 0.0)
    aa = jnp.maximum(act @ p["aw"] + p["ab"], 0.0)
    comb = jnp.concatenate([flat, pp, aa], axis=1)
    h = jnp.maximum(comb @ p["f1w"] + p["f1b"], 0.0)
    h = jnp.maximum(h @ p["f2w"] + p["f2b"], 0.0)
    return h @ p["qw"] + p["qb"]


# ----------------------------------- main ------------------------------------

if __name__ == "__main__":
    WINDOW_SIZE = 16     # window_size
    FEATURE_DIM = 4      # feature_dim
    ACTION_DIM = 1
    HIDDEN_DIM = 32
    BATCH = 2

    key = jax.random.PRNGKey(0)
    k_md, k_ps, k_ac, k_p1, k_p2 = jax.random.split(key, 5)

    # state['market_data'] : (B, window_size, feature_dim) (channels-last layout)
    market_data = jax.random.normal(k_md, (BATCH, WINDOW_SIZE, FEATURE_DIM), jnp.float32)
    # state['portfolio_state'] : (B, 2)
    portfolio_state = jax.random.normal(k_ps, (BATCH, 2), jnp.float32)
    # action : (B, action_dim)
    action = jax.random.normal(k_ac, (BATCH, ACTION_DIM), jnp.float32)

    params_q1 = init_branch_params(k_p1, FEATURE_DIM, WINDOW_SIZE, ACTION_DIM, HIDDEN_DIM)
    params_q2 = init_branch_params(k_p2, FEATURE_DIM, WINDOW_SIZE, ACTION_DIM, HIDDEN_DIM)
    fused = fuse_branch_params(params_q1, params_q2, WINDOW_SIZE, HIDDEN_DIM)

    q1, q2 = cnn_critic_forward(market_data, portfolio_state, action, fused)
    q1 = jax.block_until_ready(q1)
    q2 = jax.block_until_ready(q2)

    assert q1.shape == (BATCH, 1) and q2.shape == (BATCH, 1)
    assert bool(jnp.all(jnp.isfinite(q1))) and bool(jnp.all(jnp.isfinite(q2)))

    # Correctness vs an unfused pure-JAX reference of the PyTorch forward.
    r1 = _ref_branch(market_data, portfolio_state, action, params_q1)
    r2 = _ref_branch(market_data, portfolio_state, action, params_q2)
    assert bool(jnp.allclose(q1, r1, atol=2e-2, rtol=2e-2)), (q1, r1)
    assert bool(jnp.allclose(q2, r2, atol=2e-2, rtol=2e-2)), (q2, r2)

    print("KERNEL_OK")
</pallas_src>

<mosaic_0001>
module attributes {stable_mosaic.version = 11 : i64} {
  func.func @fused_critic_kernel(%arg0: memref<2x16x4xf32, #tpu.memory_space<vmem>>, %arg1: memref<2x2xf32, #tpu.memory_space<vmem>>, %arg2: memref<2x1xf32, #tpu.memory_space<vmem>>, %arg3: memref<12x64xf32, #tpu.memory_space<vmem>>, %arg4: memref<1x64xf32, #tpu.memory_space<vmem>>, %arg5: memref<192x128xf32, #tpu.memory_space<vmem>>, %arg6: memref<1x128xf32, #tpu.memory_space<vmem>>, %arg7: memref<384x256xf32, #tpu.memory_space<vmem>>, %arg8: memref<1x256xf32, #tpu.memory_space<vmem>>, %arg9: memref<2x16xf32, #tpu.memory_space<vmem>>, %arg10: memref<1x16xf32, #tpu.memory_space<vmem>>, %arg11: memref<1x16xf32, #tpu.memory_space<vmem>>, %arg12: memref<1x16xf32, #tpu.memory_space<vmem>>, %arg13: memref<1024x64xf32, #tpu.memory_space<vmem>>, %arg14: memref<16x64xf32, #tpu.memory_space<vmem>>, %arg15: memref<16x64xf32, #tpu.memory_space<vmem>>, %arg16: memref<1x64xf32, #tpu.memory_space<vmem>>, %arg17: memref<64x64xf32, #tpu.memory_space<vmem>>, %arg18: memref<1x64xf32, #tpu.memory_space<vmem>>, %arg19: memref<64x2xf32, #tpu.memory_space<vmem>>, %arg20: memref<1x2xf32, #tpu.memory_space<vmem>>, %arg21: memref<2x2xf32, #tpu.memory_space<vmem>>) attributes {dimension_semantics = [], scalar_prefetch = 0 : i64, scratch_operands = 0 : i64, tpu.core_type = #tpu.core_type<tc>} {
    %c0 = arith.constant 0 : index
    %c0_0 = arith.constant 0 : index
    %c0_1 = arith.constant 0 : index
    %0 = vector.load %arg0[%c0, %c0_0, %c0_1] : memref<2x16x4xf32, #tpu.memory_space<vmem>>, vector<2x16x4xf32>
    %c0_2 = arith.constant 0 : index
    %c0_3 = arith.constant 0 : index
    %1 = vector.load %arg3[%c0_2, %c0_3] : memref<12x64xf32, #tpu.memory_space<vmem>>, vector<12x64xf32>
    %c0_4 = arith.constant 0 : index
    %c0_5 = arith.constant 0 : index
    %2 = vector.load %arg4[%c0_4, %c0_5] : memref<1x64xf32, #tpu.memory_space<vmem>>, vector<1x64xf32>
    %cst = arith.constant 0.000000e+00 : f32
    %3 = vector.broadcast %cst : f32 to vector<2x1x4xf32>
    %4 = tpu.concatenate %3, %0, %3 in 1 : vector<2x1x4xf32>, vector<2x16x4xf32>, vector<2x1x4xf32> -> vector<2x18x4xf32>
    %5 = vector.extract_strided_slice %4 {offsets = [0, 0, 0], sizes = [2, 16, 4], strides = [1, 1, 1]} : vector<2x18x4xf32> to vector<2x16x4xf32>
    %6 = vector.extract_strided_slice %4 {offsets = [0, 1, 0], sizes = [2, 16, 4], strides = [1, 1, 1]} : vector<2x18x4xf32> to vector<2x16x4xf32>
    %7 = vector.extract_strided_slice %4 {offsets = [0, 2, 0], sizes = [2, 16, 4], strides = [1, 1, 1]} : vector<2x18x4xf32> to vector<2x16x4xf32>
    %8 = tpu.concatenate %5, %6, %7 in 2 : vector<2x16x4xf32>, vector<2x16x4xf32>, vector<2x16x4xf32> -> vector<2x16x12xf32>
    %9 = vector.shape_cast %8 : vector<2x16x12xf32> to vector<32x12xf32>
    %cst_6 = arith.constant dense<0.000000e+00> : vector<32x64xf32>
    %10 = tpu.matmul %9, %1, %cst_6 {dimension_numbers = #tpu.dot_dimension_numbers<[1], [0], [0], [1], [0, 0, 1, 1], [], []>} : vector<32x12xf32>, vector<12x64xf32>, vector<32x64xf32> -> vector<32x64xf32>
    %11 = vector.broadcast %2 : vector<1x64xf32> to vector<32x64xf32>
    %12 = arith.addf %10, %11 : vector<32x64xf32>
    %cst_7 = arith.constant 0.000000e+00 : f32
    %13 = vector.broadcast %cst_7 : f32 to vector<32x64xf32>
    %14 = arith.maximumf %12, %13 : vector<32x64xf32>
    %15 = vector.shape_cast %14 : vector<32x64xf32> to vector<2x16x64xf32>
    %16 = vector.shape_cast %15 : vector<2x16x64xf32> to vector<2x8x2x64xf32>
    %cst_8 = arith.constant dense<0xFF800000> : vector<2x8x64xf32>
    %17 = vector.multi_reduction <maximumf>, %16, %cst_8 [2] : vector<2x8x2x64xf32> to vector<2x8x64xf32>
    %c0_9 = arith.constant 0 : index
    %c0_10 = arith.constant 0 : index
    %18 = vector.load %arg5[%c0_9, %c0_10] : memref<192x128xf32, #tpu.memory_space<vmem>>, vector<192x128xf32>
    %c0_11 = arith.constant 0 : index
    %c0_12 = arith.constant 0 : index
    %19 = vector.load %arg6[%c0_11, %c0_12] : memref<1x128xf32, #tpu.memory_space<vmem>>, vector<1x128xf32>
    %cst_13 = arith.constant 0.000000e+00 : f32
    %20 = vector.broadcast %cst_13 : f32 to vector<2x1x64xf32>
    %21 = tpu.concatenate %20, %17, %20 in 1 : vector<2x1x64xf32>, vector<2x8x64xf32>, vector<2x1x64xf32> -> vector<2x10x64xf32>
    %22 = vector.extract_strided_slice %21 {offsets = [0, 0, 0], sizes = [2, 8, 64], strides = [1, 1, 1]} : vector<2x10x64xf32> to vector<2x8x64xf32>
    %23 = vector.extract_strided_slice %21 {offsets = [0, 1, 0], sizes = [2, 8, 64], strides = [1, 1, 1]} : vector<2x10x64xf32> to vector<2x8x64xf32>
    %24 = vector.extract_strided_slice %21 {offsets = [0, 2, 0], sizes = [2, 8, 64], strides = [1, 1, 1]} : vector<2x10x64xf32> to vector<2x8x64xf32>
    %25 = tpu.concatenate %22, %23, %24 in 2 : vector<2x8x64xf32>, vector<2x8x64xf32>, vector<2x8x64xf32> -> vector<2x8x192xf32>
    %26 = vector.shape_cast %25 : vector<2x8x192xf32> to vector<16x192xf32>
    %cst_14 = arith.constant dense<0.000000e+00> : vector<16x128xf32>
    %27 = tpu.matmul %26, %18, %cst_14 {dimension_numbers = #tpu.dot_dimension_numbers<[1], [0], [0], [1], [0, 0, 1, 1], [], []>} : vector<16x192xf32>, vector<192x128xf32>, vector<16x128xf32> -> vector<16x128xf32>
    %28 = vector.broadcast %19 : vector<1x128xf32> to vector<16x128xf32>
    %29 = arith.addf %27, %28 : vector<16x128xf32>
    %cst_15 = arith.constant 0.000000e+00 : f32
    %30 = vector.broadcast %cst_15 : f32 to vector<16x128xf32>
    %31 = arith.maximumf %29, %30 : vector<16x128xf32>
    %32 = vector.shape_cast %31 : vector<16x128xf32> to vector<2x8x128xf32>
    %33 = vector.shape_cast %32 : vector<2x8x128xf32> to vector<2x4x2x128xf32>
    %cst_16 = arith.constant dense<0xFF800000> : vector<2x4x128xf32>
    %34 = vector.multi_reduction <maximumf>, %33, %cst_16 [2] : vector<2x4x2x128xf32> to vector<2x4x128xf32>
    %c0_17 = arith.constant 0 : index
    %c0_18 = arith.constant 0 : index
    %35 = vector.load %arg7[%c0_17, %c0_18] : memref<384x256xf32, #tpu.memory_space<vmem>>, vector<384x256xf32>
    %c0_19 = arith.constant 0 : index
    %c0_20 = arith.constant 0 : index
    %36 = vector.load %arg8[%c0_19, %c0_20] : memref<1x256xf32, #tpu.memory_space<vmem>>, vector<1x256xf32>
    %cst_21 = arith.constant 0.000000e+00 : f32
    %37 = vector.broadcast %cst_21 : f32 to vector<2x1x128xf32>
    %38 = tpu.concatenate %37, %34, %37 in 1 : vector<2x1x128xf32>, vector<2x4x128xf32>, vector<2x1x128xf32> -> vector<2x6x128xf32>
    %39 = vector.extract_strided_slice %38 {offsets = [0, 0, 0], sizes = [2, 4, 128], strides = [1, 1, 1]} : vector<2x6x128xf32> to vector<2x4x128xf32>
    %40 = vector.extract_strided_slice %38 {offsets = [0, 1, 0], sizes = [2, 4, 128], strides = [1, 1, 1]} : vector<2x6x128xf32> to vector<2x4x128xf32>
    %41 = vector.extract_strided_slice %38 {offsets = [0, 2, 0], sizes = [2, 4, 128], strides = [1, 1, 1]} : vector<2x6x128xf32> to vector<2x4x128xf32>
    %42 = tpu.concatenate %39, %40, %41 in 2 : vector<2x4x128xf32>, vector<2x4x128xf32>, vector<2x4x128xf32> -> vector<2x4x384xf32>
    %43 = vector.shape_cast %42 : vector<2x4x384xf32> to vector<8x384xf32>
    %cst_22 = arith.constant dense<0.000000e+00> : vector<8x256xf32>
    %44 = tpu.matmul %43, %35, %cst_22 {dimension_numbers = #tpu.dot_dimension_numbers<[1], [0], [0], [1], [0, 0, 1, 1], [], []>} : vector<8x384xf32>, vector<384x256xf32>, vector<8x256xf32> -> vector<8x256xf32>
    %45 = vector.broadcast %36 : vector<1x256xf32> to vector<8x256xf32>
    %46 = arith.addf %44, %45 : vector<8x256xf32>
    %cst_23 = arith.constant 0.000000e+00 : f32
    %47 = vector.broadcast %cst_23 : f32 to vector<8x256xf32>
    %48 = arith.maximumf %46, %47 : vector<8x256xf32>
    %49 = vector.shape_cast %48 : vector<8x256xf32> to vector<2x4x256xf32>
    %50 = vector.shape_cast %49 : vector<2x4x256xf32> to vector<2x1024xf32>
    %c0_24 = arith.constant 0 : index
    %c0_25 = arith.constant 0 : index
    %51 = vector.load %arg1[%c0_24, %c0_25] : memref<2x2xf32, #tpu.memory_space<vmem>>, vector<2x2xf32>
    %c0_26 = arith.constant 0 : index
    %c0_27 = arith.constant 0 : index
    %52 = vector.load %arg9[%c0_26, %c0_27] : memref<2x16xf32, #tpu.memory_space<vmem>>, vector<2x16xf32>
    %cst_28 = arith.constant dense<0.000000e+00> : vector<2x16xf32>
    %53 = tpu.matmul %51, %52, %cst_28 {dimension_numbers = #tpu.dot_dimension_numbers<[1], [0], [0], [1], [0, 0, 1, 1], [], []>} : vector<2x2xf32>, vector<2x16xf32>, vector<2x16xf32> -> vector<2x16xf32>
    %c0_29 = arith.constant 0 : index
    %c0_30 = arith.constant 0 : index
    %54 = vector.load %arg10[%c0_29, %c0_30] : memref<1x16xf32, #tpu.memory_space<vmem>>, vector<1x16xf32>
    %55 = vector.broadcast %54 : vector<1x16xf32> to vector<2x16xf32>
    %56 = arith.addf %53, %55 : vector<2x16xf32>
    %cst_31 = arith.constant 0.000000e+00 : f32
    %57 = vector.broadcast %cst_31 : f32 to vector<2x16xf32>
    %58 = arith.maximumf %56, %57 : vector<2x16xf32>
    %c0_32 = arith.constant 0 : index
    %c0_33 = arith.constant 0 : index
    %59 = vector.load %arg2[%c0_32, %c0_33] : memref<2x1xf32, #tpu.memory_space<vmem>>, vector<2x1xf32>
    %c0_34 = arith.constant 0 : index
    %c0_35 = arith.constant 0 : index
    %60 = vector.load %arg11[%c0_34, %c0_35] : memref<1x16xf32, #tpu.memory_space<vmem>>, vector<1x16xf32>
    %cst_36 = arith.constant dense<0.000000e+00> : vector<2x16xf32>
    %61 = tpu.matmul %59, %60, %cst_36 {dimension_numbers = #tpu.dot_dimension_numbers<[1], [0], [0], [1], [0, 0, 1, 1], [], []>} : vector<2x1xf32>, vector<1x16xf32>, vector<2x16xf32> -> vector<2x16xf32>
    %c0_37 = arith.constant 0 : index
    %c0_38 = arith.constant 0 : index
    %62 = vector.load %arg12[%c0_37, %c0_38] : memref<1x16xf32, #tpu.memory_space<vmem>>, vector<1x16xf32>
    %63 = vector.broadcast %62 : vector<1x16xf32> to vector<2x16xf32>
    %64 = arith.addf %61, %63 : vector<2x16xf32>
    %cst_39 = arith.constant 0.000000e+00 : f32
    %65 = vector.broadcast %cst_39 : f32 to vector<2x16xf32>
    %66 = arith.maximumf %64, %65 : vector<2x16xf32>
    %c0_40 = arith.constant 0 : index
    %c0_41 = arith.constant 0 : index
    %67 = vector.load %arg13[%c0_40, %c0_41] : memref<1024x64xf32, #tpu.memory_space<vmem>>, vector<1024x64xf32>
    %cst_42 = arith.constant dense<0.000000e+00> : vector<2x64xf32>
    %68 = tpu.matmul %50, %67, %cst_42 {dimension_numbers = #tpu.dot_dimension_numbers<[1], [0], [0], [1], [0, 0, 1, 1], [], []>} : vector<2x1024xf32>, vector<1024x64xf32>, vector<2x64xf32> -> vector<2x64xf32>
    %c0_43 = arith.constant 0 : index
    %c0_44 = arith.constant 0 : index
    %69 = vector.load %arg14[%c0_43, %c0_44] : memref<16x64xf32, #tpu.memory_space<vmem>>, vector<16x64xf32>
    %cst_45 = arith.constant dense<0.000000e+00> : vector<2x64xf32>
    %70 = tpu.matmul %58, %69, %cst_45 {dimension_numbers = #tpu.dot_dimension_numbers<[1], [0], [0], [1], [0, 0, 1, 1], [], []>} : vector<2x16xf32>, vector<16x64xf32>, vector<2x64xf32> -> vector<2x64xf32>
    %71 = arith.addf %68, %70 : vector<2x64xf32>
    %c0_46 = arith.constant 0 : index
    %c0_47 = arith.constant 0 : index
    %72 = vector.load %arg15[%c0_46, %c0_47] : memref<16x64xf32, #tpu.memory_space<vmem>>, vector<16x64xf32>
    %cst_48 = arith.constant dense<0.000000e+00> : vector<2x64xf32>
    %73 = tpu.matmul %66, %72, %cst_48 {dimension_numbers = #tpu.dot_dimension_numbers<[1], [0], [0], [1], [0, 0, 1, 1], [], []>} : vector<2x16xf32>, vector<16x64xf32>, vector<2x64xf32> -> vector<2x64xf32>
    %74 = arith.addf %71, %73 : vector<2x64xf32>
    %c0_49 = arith.constant 0 : index
    %c0_50 = arith.constant 0 : index
    %75 = vector.load %arg16[%c0_49, %c0_50] : memref<1x64xf32, #tpu.memory_space<vmem>>, vector<1x64xf32>
    %76 = vector.broadcast %75 : vector<1x64xf32> to vector<2x64xf32>
    %77 = arith.addf %74, %76 : vector<2x64xf32>
    %cst_51 = arith.constant 0.000000e+00 : f32
    %78 = vector.broadcast %cst_51 : f32 to vector<2x64xf32>
    %79 = arith.maximumf %77, %78 : vector<2x64xf32>
    %c0_52 = arith.constant 0 : index
    %c0_53 = arith.constant 0 : index
    %80 = vector.load %arg17[%c0_52, %c0_53] : memref<64x64xf32, #tpu.memory_space<vmem>>, vector<64x64xf32>
    %cst_54 = arith.constant dense<0.000000e+00> : vector<2x64xf32>
    %81 = tpu.matmul %79, %80, %cst_54 {dimension_numbers = #tpu.dot_dimension_numbers<[1], [0], [0], [1], [0, 0, 1, 1], [], []>} : vector<2x64xf32>, vector<64x64xf32>, vector<2x64xf32> -> vector<2x64xf32>
    %c0_55 = arith.constant 0 : index
    %c0_56 = arith.constant 0 : index
    %82 = vector.load %arg18[%c0_55, %c0_56] : memref<1x64xf32, #tpu.memory_space<vmem>>, vector<1x64xf32>
    %83 = vector.broadcast %82 : vector<1x64xf32> to vector<2x64xf32>
    %84 = arith.addf %81, %83 : vector<2x64xf32>
    %cst_57 = arith.constant 0.000000e+00 : f32
    %85 = vector.broadcast %cst_57 : f32 to vector<2x64xf32>
    %86 = arith.maximumf %84, %85 : vector<2x64xf32>
    %c0_58 = arith.constant 0 : index
    %c0_59 = arith.constant 0 : index
    %87 = vector.load %arg19[%c0_58, %c0_59] : memref<64x2xf32, #tpu.memory_space<vmem>>, vector<64x2xf32>
    %cst_60 = arith.constant dense<0.000000e+00> : vector<2x2xf32>
    %88 = tpu.matmul %86, %87, %cst_60 {dimension_numbers = #tpu.dot_dimension_numbers<[1], [0], [0], [1], [0, 0, 1, 1], [], []>} : vector<2x64xf32>, vector<64x2xf32>, vector<2x2xf32> -> vector<2x2xf32>
    %c0_61 = arith.constant 0 : index
    %c0_62 = arith.constant 0 : index
    %89 = vector.load %arg20[%c0_61, %c0_62] : memref<1x2xf32, #tpu.memory_space<vmem>>, vector<1x2xf32>
    %90 = vector.broadcast %89 : vector<1x2xf32> to vector<2x2xf32>
    %91 = arith.addf %88, %90 : vector<2x2xf32>
    %c0_63 = arith.constant 0 : index
    %c0_64 = arith.constant 0 : index
    %92 = vector.load %arg21[%c0_63, %c0_64] : memref<2x2xf32, #tpu.memory_space<vmem>>, vector<2x2xf32>
    tpu.vector_store %arg21[%c0_63, %c0_64], %91 {strides = array<i32>} : memref<2x2xf32, #tpu.memory_space<vmem>>, vector<2x2xf32>,
    return
  }
}

</mosaic_0001>

<bundles_post_ra>
// kernel: tpu_custom_call.1
= control target key start
LH: loop header
LB: loop body
LE: loop exit
PB: predicated region body
PF: predicated region fallthrough
CT: control target
= control target key end

     0   :  { %s3835_s0 = inlined_call_operand.vmem [shape: f32[2,16,4], index: 0, kind: input, shape index: {}]   ;;  %s3836_s1 = inlined_call_operand.vmem [shape: f32[2,2], index: 1, kind: input, shape index: {}]   ;;  %s3837_s2 = inlined_call_operand.vmem [shape: f32[2,1], index: 2, kind: input, shape index: {}]   ;;  %s3838_s3 = inlined_call_operand.vmem [shape: f32[12,64], index: 3, kind: input, shape index: {}]   ;;  %s3839_s4 = inlined_call_operand.vmem [shape: f32[1,64], index: 4, kind: input, shape index: {}]   ;;  %s3840_s5 = inlined_call_operand.vmem [shape: f32[192,128], index: 5, kind: input, shape index: {}]   ;;  %s3841_s6 = inlined_call_operand.vmem [shape: f32[1,128], index: 6, kind: input, shape index: {}]   ;;  %s3842_s7 = inlined_call_operand.vmem [shape: f32[384,256], index: 7, kind: input, shape index: {}]   ;;  %s3843_s8 = inlined_call_operand.vmem [shape: f32[1,256], index: 8, kind: input, shape index: {}]   ;;  %s3844_s9 = inlined_call_operand.vmem [shape: f32[2,16], index: 9, kind: input, shape index: {}]   ;;  %s3845_s10 = inlined_call_operand.vmem [shape: f32[1,16], index: 10, kind: input, shape index: {}]   ;;  %s3846_s11 = inlined_call_operand.vmem [shape: f32[1,16], index: 11, kind: input, shape index: {}]   ;;  %s3847_s12 = inlined_call_operand.vmem [shape: f32[1,16], index: 12, kind: input, shape index: {}]   ;;  %s3848_s13 = inlined_call_operand.vmem [shape: f32[1024,64], index: 13, kind: input, shape index: {}]   ;;  %s3849_s14 = inlined_call_operand.vmem [shape: f32[16,64], index: 14, kind: input, shape index: {}]   ;;  %s3850_s15 = inlined_call_operand.vmem [shape: f32[16,64], index: 15, kind: input, shape index: {}]   ;;  %s3851_s16 = inlined_call_operand.vmem [shape: f32[1,64], index: 16, kind: input, shape index: {}]   ;;  %s3852_s17 = inlined_call_operand.vmem [shape: f32[64,64], index: 17, kind: input, shape index: {}]   ;;  %s3853_s18 = inlined_call_operand.vmem [shape: f32[1,64], index: 18, kind: input, shape index: {}]   ;;  %s3854_s19 = inlined_call_operand.vmem [shape: f32[64,2], index: 19, kind: input, shape index: {}]   ;;  %s3855_s20 = inlined_call_operand.vmem [shape: f32[1,2], index: 20, kind: input, shape index: {}]   ;;  %s3856_s21 = inlined_call_operand.hbm [shape: f32[2,2], index: 21, kind: output, shape index: {}]  }
   0x1   :  { %3860 = sst [smem:[#allocation5_spill]] %s3835_s0 }
   0x2   :  { %3861 = sst [smem:[#allocation6_spill]] %s3836_s1 }
   0x3   :  { %3862 = sst [smem:[#allocation7_spill]] %s3837_s2 }
   0x4   :  { %3863 = sst [smem:[#allocation8_spill]] %s3838_s3 }
   0x5   :  { %3864 = sst [smem:[#allocation9_spill]] %s3839_s4 }
   0x6   :  { %3865 = sst [smem:[#allocation10_spill]] %s3840_s5 }
   0x7   :  { %s3866_s26 = sld [smem:[#allocation5_spill]]  ;;  %vm80_vm0 = vcmask 1040384   ;;  %vm124_vm1 = vcmask 1045504   ;;  %vm101_vm2 = vcmask 1046528   ;;  %s3867_s22 = sld [smem:[#allocation8_spill]] }
   0xd   :  { %v69_v0 = vld [vmem:[%s3866_s26] sm:$0xff]  ;;  %v70_v1 = vld [vmem:[%s3866_s26 + $0x8] sm:$0xff]  ;;  %v71_v4 = vld [vmem:[%s3866_s26 + $0x10] sm:$0xff] }
   0xe   :  { %v81_v2 = vrot.slane %v69_v0, 7  ;;  %v82_v3 = vrot.slane %v70_v1, 7  ;;  %v72_v5 = vld [vmem:[%s3866_s26 + $0x18] sm:$0xff]  ;;  %v84_v6 = vrot.slane %v71_v4, 7  ;;  %v73_v11 = vld [vmem:[%s3867_s22] sm:$0xff] }
   0xf   :  { %v85_v7 = vrot.slane %v72_v5, 7 }
  0x10   :  { %v83_v8 = vsel %vm80_vm0, %v81_v2, %v82_v3  ;;  %v93_v9 = vsel %vm80_vm0, 0.0, %v81_v2  ;;  %v95_v10 = vsel %vm80_vm0, %v82_v3, 0.0 }
  0x11   :  { %26 = vsyncpa [#allocation3], 0  ;;  %v125_v12 = vrot.slane %v93_v9, 2  ;;  %v126_v13 = vrot.slane %v83_v8, 2  ;;  %v102_v14 = vrot.slane %v93_v9, 1  ;;  %v103_v15 = vrot.slane %v83_v8, 1 }
  0x12   :  { %v74_v16 = vld [vmem:[%s3867_s22 + $0x8] sm:$0xf]  ;;  %v128_v17 = vrot.slane %v95_v10, 2  ;;  %v105_v18 = vrot.slane %v95_v10, 1  ;;  %v86_v19 = vsel %vm80_vm0, %v84_v6, %v85_v7  ;;  %v96_v20 = vsel %vm80_vm0, %v85_v7, 0.0  ;;  %s2658_s24 = smov 8  }
  0x13   :  { %v127_v21 = vsel %vm124_vm1, %v125_v12, %v126_v13  ;;  %v104_v22 = vsel %vm101_vm2, %v102_v14, %v103_v15  ;;  %s2659_s2 = smov 4   ;;  %v108_v23 = vrot.slane %v86_v19, 1  ;;  %v94_v24 = vsel %vm80_vm0, 0.0, %v84_v6  ;;  %s3868_s27 = sld [smem:[#allocation10_spill]] }
  0x14   :  { %135 = vrot.lane.b32.xlu1 %v127_v21, %s2658_s24  ;;  %112 = vrot.lane.b32.xlu0 %v104_v22, %s2659_s2  ;;  %vm176_vm3 = vcmask 1043456   ;;  %v2323_v25 = vpack.c.bf16 %v74_v16, %v73_v11  ;;  %v129_v26 = vsel %vm124_vm1, %v126_v13, %v128_v17  ;;  %v106_v27 = vsel %vm101_vm2, %v103_v15, %v105_v18  ;;  %s3869_s5 = sld [smem:[#allocation9_spill]]  ;;  %s3870_s23 = sld [smem:[#allocation6_spill]] }
  0x15   :  { %v110_v28 = vrot.slane %v96_v20, 1  ;;  %v107_v29 = vrot.slane %v94_v24, 1  ;;  %vm2660_vm4 = vmmov 1   ;;  %v131_v30 = vrot.slane %v86_v19, 2  ;;  %s3871_s26 = sld [smem:[#allocation7_spill]] }
  0x16   :  { %vm2324_vm5 = vmpackc.low %vm176_vm3, %vm2660_vm4  ;;  %v133_v33 = vrot.slane %v96_v20, 2  ;;  %v130_v34 = vrot.slane %v94_v24, 2  ;;  %vm147_vm6 = vcmask 31744   ;;  %vm152_vm7 = vcmask 64512  }
  0x17   :  { %v111_v31 = vsel %vm101_vm2, %v108_v23, %v110_v28  ;;  %v109_v32 = vsel %vm101_vm2, %v107_v29, %v108_v23  ;;  %2325 = vmatprep.subr.msk.bf16.mxu1 %vm2324_vm5, %v2323_v25  ;;  %vm163_vm8 = vcmask 97280   ;;  %v2661_v56 = vmov 0.0|0.0  }
  0x18   :  { %137 = vrot.lane.b32.xlu1 %v129_v26, %s2658_s24  ;;  %114 = vrot.lane.b32.xlu0 %v106_v27, %s2659_s2  ;;  %v134_v35 = vsel %vm124_vm1, %v131_v30, %v133_v33  ;;  %v132_v36 = vsel %vm124_vm1, %v130_v34, %v131_v30  ;;  %v2662_v26 = vmov 1983009808   ;;  %v277_v28 = vlaneseq }
  0x19   :  { %2328 = vmatpush3.bf16.msk.msra.mxu1 %vm2324_vm5, %v2323_v25  ;;  %v470_v53 = vld [vmem:[%s3868_s27] sm:$0xff]  ;;  %v471_v54 = vld [vmem:[%s3868_s27 + $0x8] sm:$0xff]  ;;  %v472_v55 = vld [vmem:[%s3868_s27 + $0x10] sm:$0xff]  ;;  %v275_v27 = vunpack.c.l.s4 %v2662_v26  ;;  %vm357_vm9 = vcmask 517120   ;;  %vm511_vm10 = vcmask 1042434   ;;  %vm513_vm11 = vcmask 1043459  }
  0x1a   :  { %2329 = vmatprep.subr.bf16.mxu1 %v2661_v56  ;;  %v2330_v57 = vpack.c.bf16 %v471_v54, %v470_v53  ;;  %v473_v58 = vld [vmem:[%s3868_s27 + $0x18] sm:$0xff]  ;;  %v474_v60 = vld [vmem:[%s3868_s27 + $0x20] sm:$0xff]  ;;  %v475_v61 = vld [vmem:[%s3868_s27 + $0x28] sm:$0xff]  ;;  %v2907_v30 = vshrl.u32 %v277_v28, 7  ;;  %vm515_vm12 = vcmask 1044484   ;;  %vm517_vm13 = vcmask 1045509  }
  0x1b   :  { %v2333_v59 = vpack.c.bf16 %v473_v58, %v472_v55  ;;  %v2336_v62 = vpack.c.bf16 %v475_v61, %v474_v60  ;;  %v476_v63 = vld [vmem:[%s3868_s27 + $0x30] sm:$0xff]  ;;  %v477_v0 = vld [vmem:[%s3868_s27 + $0x38] sm:$0xff]  ;;  %v478_v2 = vld [vmem:[%s3868_s27 + $0x40] sm:$0xff]  ;;  %v276_v29 = vunpack.c.0.s8 %v275_v27  ;;  %vm519_vm14 = vcmask 1046534  }
  0x1c   :  { %118 = vrot.lane.b32.xlu1 %v111_v31, %s2659_s2  ;;  %116 = vrot.lane.b32.xlu0 %v109_v32, %s2659_s2  ;;  %v2339_v1 = vpack.c.bf16 %v477_v0, %v476_v63  ;;  %v479_v3 = vld [vmem:[%s3868_s27 + $0x48] sm:$0xff]  ;;  %v480_v5 = vld [vmem:[%s3868_s27 + $0x50] sm:$0xff]  ;;  %vm521_vm15 = vcmask 1047559   ;;  %vm559_vm3 = vcmask 523264   ;;  %s2663_s2 = smov 64   ;;  %vm1066_vm4 = vcmask 15360  }
  0x1d   :  { %v2342_v4 = vpack.c.bf16 %v479_v3, %v478_v2  ;;  %v481_v6 = vld [vmem:[%s3868_s27 + $0x58] sm:$0xff]  ;;  %v484_v11 = vld [vmem:[%s3868_s27 + $0x70] sm:$0xff]  ;;  %v486_v14 = vld [vmem:[%s3868_s27 + $0x80] sm:$0xff]  ;;  %v2916_v34 = vsub.s32 %v276_v29, %v2907_v30  ;;  %vm1153_vm5 = vcmask 7168  }
  0x1e   :  { %v2345_v7 = vpack.c.bf16 %v481_v6, %v480_v5  ;;  %v485_v12 = vld [vmem:[%s3868_s27 + $0x78] sm:$0xff]  ;;  %v487_v15 = vld [vmem:[%s3868_s27 + $0x88] sm:$0xff]  ;;  %v488_v17 = vld [vmem:[%s3868_s27 + $0x90] sm:$0xff] }
  0x1f   :  { %v2351_v13 = vpack.c.bf16 %v485_v12, %v484_v11  ;;  %v2354_v16 = vpack.c.bf16 %v487_v15, %v486_v14  ;;  %v489_v18 = vld [vmem:[%s3868_s27 + $0x98] sm:$0xff]  ;;  %v490_v20 = vld [vmem:[%s3868_s27 + $0xa0] sm:$0xff]  ;;  %v491_v21 = vld [vmem:[%s3868_s27 + $0xa8] sm:$0xff] }
  0x20   :  { %141 = vrot.lane.b32.xlu1 %v134_v35, %s2658_s24  ;;  %139 = vrot.lane.b32.xlu0 %v132_v36, %s2658_s24  ;;  %v2360_v22 = vpack.c.bf16 %v491_v21, %v490_v20  ;;  %v492_v23 = vld [vmem:[%s3868_s27 + $0xb0] sm:$0xff]  ;;  %v2912_v31 = vld [vmem:[%s3869_s5] ss:$0 sm:$0xff]  ;;  %s2668_s24 = smov [#allocation2]  }
  0x21   :  { %s2045_s25 = sshll.u32 %s2668_s24, 4  ;;  %s2046_s25 = int_to_ptr.vmem [resolvable:$true] %s2045_s25 }
  0x22   :  { %p2639_p1 = scmp.lt.s32.totalorder %s2046_s25, %s2046_s25 }
  0x86   :  { %v136_v37 = vpop.permute.xlu1 %135  ;;  %v113_v38 = vpop.permute.xlu0 %112 }
  0x87   :  { %v148_v39 = vsel %vm147_vm6, %v93_v9, %v113_v38  ;;  %v483_v9 = vld [vmem:[%s3868_s27 + $0x68] sm:$0xff] }
  0x88   :  { %v153_v40 = vsel %vm152_vm7, %v148_v39, %v136_v37 }
  0x89   :  { %2255 = vmatprep.mubr.msk.f32.mxu1 %vm163_vm8, %v153_v40 }
  0x8a   :  { %v138_v41 = vpop.permute.xlu1 %137  ;;  %v115_v42 = vpop.permute.xlu0 %114 }
  0x8b   :  { %v149_v43 = vsel %vm147_vm6, %v83_v8, %v115_v42  ;;  %v482_v8 = vld [vmem:[%s3868_s27 + $0x60] sm:$0xff] }
  0x8c   :  { %v154_v44 = vsel %vm152_vm7, %v149_v43, %v138_v41  ;;  %v2348_v10 = vpack.c.bf16 %v483_v9, %v482_v8 }
  0x8d   :  { %2256 = vmatmul.mubr.msk.f32.vlgmr.msra.gmra.mrb[0].mxu1 %vm163_vm8, %v154_v44 }
  0x8e   :  { %v119_v45 = vpop.permute.xlu1 %118  ;;  %v117_v46 = vpop.permute.xlu0 %116  ;;  %2331 = vmatpush1.bf16.msra.mxu1 %v2330_v57 }
  0x8f   :  { %v151_v47 = vsel %vm147_vm6, %v86_v19, %v119_v45  ;;  %v150_v48 = vsel %vm147_vm6, %v94_v24, %v117_v46  ;;  %2332 = vmatprep.subr.bf16.mxu1 %v2661_v56  ;;  %v2357_v19 = vpack.c.bf16 %v489_v18, %v488_v17  ;;  %v493_v24 = vld [vmem:[%s3868_s27 + $0xb8] sm:$0xff]  ;;  %vm865_vm6 = vcmask 1044480  }
  0x90   :  { %v2363_v25 = vpack.c.bf16 %v493_v24, %v492_v23 }
  0x92   :  { %v142_v49 = vpop.permute.xlu1 %141  ;;  %v140_v50 = vpop.permute.xlu0 %139  ;;  %2334 = vmatpush1.bf16.msra.mxu1 %v2333_v59 }
  0x93   :  { %v156_v51 = vsel %vm152_vm7, %v151_v47, %v142_v49  ;;  %v155_v52 = vsel %vm152_vm7, %v150_v48, %v140_v50  ;;  %2335 = vmatprep.subr.bf16.mxu1 %v2661_v56  ;;  %vm2037_vm7 = vcmask 9216  }
  0x94   :  { %2258 = vmatprep.mubr.msk.f32.mxu1 %vm163_vm8, %v155_v52 }
  0x95   :  { %2259 = vmatmul.mubr.msk.f32.gmra.mrb[2].mxu1 %vm163_vm8, %v156_v51 }
  0x96   :  { %2337 = vmatpush1.bf16.msra.mxu1 %v2336_v62 }
  0x97   :  { %2338 = vmatprep.subr.bf16.mxu1 %v2661_v56 }
  0x9a   :  { %2340 = vmatpush1.bf16.msra.mxu1 %v2339_v1 }
  0x9b   :  { %2341 = vmatprep.subr.bf16.mxu1 %v2661_v56 }
  0x9e   :  { %2343 = vmatpush1.bf16.msra.mxu1 %v2342_v4 }
  0x9f   :  { %2344 = vmatprep.subr.bf16.mxu1 %v2661_v56 }
  0xa2   :  { %2346 = vmatpush1.bf16.msra.mxu1 %v2345_v7 }
  0xa3   :  { %2347 = vmatprep.subr.bf16.mxu1 %v2661_v56 }
  0xa6   :  { %2349 = vmatpush1.bf16.msra.mxu1 %v2348_v10 }
  0xa7   :  { %2350 = vmatprep.subr.bf16.mxu1 %v2661_v56 }
  0xaa   :  { %2352 = vmatpush1.bf16.msra.mxu1 %v2351_v13 }
  0xab   :  { %2353 = vmatprep.subr.bf16.mxu1 %v2661_v56 }
  0xae   :  { %2355 = vmatpush1.bf16.msra.mxu1 %v2354_v16 }
  0xaf   :  { %2356 = vmatprep.subr.bf16.mxu1 %v2661_v56 }
  0xb2   :  { %2358 = vmatpush1.bf16.msra.mxu1 %v2357_v19 }
  0xb3   :  { %2359 = vmatprep.subr.bf16.mxu1 %v2661_v56 }
  0xb6   :  { %2361 = vmatpush1.bf16.msra.mxu1 %v2360_v22 }
  0xb7   :  { %2362 = vmatprep.subr.bf16.mxu1 %v2661_v56 }
  0xba   :  { %2364 = vmatpush1.bf16.msra.mxu1 %v2363_v25 }
 0x160   :  { %v2257_v32 = vpop.f32.mrb[0].mxu1 }
 0x161   :  { %v252_v33 = vadd.f32 %v2257_v32, %v2912_v31  ;;  %v246_v35 = vpop.f32.mrb[1].mxu1 }
 0x162   :  { %v247_v36 = vadd.f32 %v2912_v31, %v246_v35 }
 0x163   :  { %v266_v37 = vmax.f32 %v252_v33, 0.0 }
 0x164   :  { %v265_v38 = vmax.f32 %v247_v36, 0.0 }
 0x165   :  { %v290_v39 = vcombine.high %v266_v37, %v266_v37  ;;  %v297_v40 = vrot.slane %v266_v37, %v2916_v34 }
 0x166   :  { %v273_v41 = vcombine.high %v265_v38, %v265_v38  ;;  %v280_v42 = vrot.slane %v265_v38, %v2916_v34 }
 0x167   :  { %v304_v43 = vrot.slane %v290_v39, %v2916_v34  ;;  %v305_v44 = vcombine.high %v297_v40, %v297_v40  ;;  %v386_v45 = vsel %vm357_vm9, %v297_v40, -inf }
 0x168   :  { %v387_v46 = vrot.slane %v386_v45, 4  ;;  %v287_v47 = vrot.slane %v273_v41, %v2916_v34  ;;  %v288_v48 = vcombine.high %v280_v42, %v280_v42  ;;  %v358_v49 = vsel %vm357_vm9, %v280_v42, -inf  ;;  %v2260_v50 = vpop.f32.mrb[2].mxu1 }
 0x169   :  { %v306_v51 = vcombine.high %v304_v43, %v304_v43  ;;  %v393_v52 = vsel %vm357_vm9, %v305_v44, -inf  ;;  %v400_v53 = vsel %vm357_vm9, %v304_v43, -inf  ;;  %v359_v54 = vrot.slane %v358_v49, 4  ;;  %v256_v55 = vpop.f32.mrb[3].mxu1 }
 0x16a   :  { %v388_v57 = vmax.f32 %v386_v45, %v387_v46  ;;  %v394_v58 = vrot.slane %v393_v52, 4  ;;  %v401_v59 = vrot.slane %v400_v53, 4  ;;  %v289_v60 = vcombine.high %v287_v47, %v287_v47 }
 0x16b   :  { %v407_v61 = vsel %vm357_vm9, %v306_v51, -inf  ;;  %v360_v62 = vmax.f32 %v358_v49, %v359_v54  ;;  %v365_v63 = vsel %vm357_vm9, %v288_v48, -inf  ;;  %v372_v0 = vsel %vm357_vm9, %v287_v47, -inf }
 0x16c   :  { %v389_v1 = vrot.slane %v388_v57, 2  ;;  %v395_v2 = vmax.f32 %v393_v52, %v394_v58  ;;  %v402_v3 = vmax.f32 %v400_v53, %v401_v59  ;;  %v408_v4 = vrot.slane %v407_v61, 4 }
 0x16d   :  { %v361_v5 = vrot.slane %v360_v62, 2  ;;  %v366_v6 = vrot.slane %v365_v63, 4  ;;  %v373_v7 = vrot.slane %v372_v0, 4  ;;  %v379_v8 = vsel %vm357_vm9, %v289_v60, -inf }
 0x16e   :  { %v390_v9 = vmax.f32 %v388_v57, %v389_v1  ;;  %v396_v10 = vrot.slane %v395_v2, 2  ;;  %v409_v11 = vmax.f32 %v407_v61, %v408_v4  ;;  %v380_v15 = vrot.slane %v379_v8, 4 }
 0x16f   :  { %v362_v12 = vmax.f32 %v360_v62, %v361_v5  ;;  %v367_v13 = vmax.f32 %v365_v63, %v366_v6  ;;  %v374_v14 = vmax.f32 %v372_v0, %v373_v7  ;;  %v403_v16 = vrot.slane %v402_v3, 2 }
 0x170   :  { %v410_v17 = vrot.slane %v409_v11, 2  ;;  %v381_v20 = vmax.f32 %v379_v8, %v380_v15  ;;  %v391_v21 = vrot.slane %v390_v9, 1  ;;  %v2931_v22 = vmax.f32 %v395_v2, %v396_v10 }
 0x171   :  { %v368_v18 = vrot.slane %v367_v13, 2  ;;  %v375_v19 = vrot.slane %v374_v14, 2  ;;  %v262_v23 = vadd.f32 %v2260_v50, %v2912_v31  ;;  %v363_v24 = vrot.slane %v362_v12, 1 }
 0x172   :  { %v382_v27 = vrot.slane %v381_v20, 2  ;;  %v2934_v28 = vmax.f32 %v402_v3, %v403_v16  ;;  %v257_v32 = vadd.f32 %v2912_v31, %v256_v55  ;;  %v411_v37 = vmax.f32 %v409_v11, %v410_v17 }
 0x173   :  { %v369_v25 = vmax.f32 %v367_v13, %v368_v18  ;;  %v376_v26 = vmax.f32 %v374_v14, %v375_v19  ;;  %v268_v29 = vmax.f32 %v262_v23, 0.0  ;;  %v2937_v38 = vmax.f32 %v390_v9, %v391_v21 }
 0x174   :  { %v383_v36 = vmax.f32 %v381_v20, %v382_v27  ;;  %v267_v41 = vmax.f32 %v257_v32, 0.0  ;;  %v398_v42 = vrot.slane %v2931_v22, 1  ;;  %v364_v43 = vmax.f32 %v362_v12, %v363_v24 }
 0x175   :  { %v370_v33 = vrot.slane %v369_v25, 1  ;;  %v377_v35 = vrot.slane %v376_v26, 1  ;;  %v324_v39 = vcombine.high %v268_v29, %v268_v29  ;;  %v331_v40 = vrot.slane %v268_v29, %v2916_v34 }
 0x176   :  { %v384_v45 = vrot.slane %v383_v36, 1  ;;  %v307_v48 = vcombine.high %v267_v41, %v267_v41  ;;  %v314_v51 = vrot.slane %v267_v41, %v2916_v34  ;;  %v412_v52 = vrot.slane %v411_v37, 1 }
 0x177   :  { %v371_v44 = vmax.f32 %v369_v25, %v370_v33  ;;  %v338_v46 = vrot.slane %v324_v39, %v2916_v34  ;;  %v339_v47 = vcombine.high %v331_v40, %v331_v40  ;;  %v442_v31 = vsel %vm357_vm9, %v331_v40, -inf }
 0x178   :  { %v378_v49 = vmax.f32 %v376_v26, %v377_v35  ;;  %v443_v50 = vrot.slane %v442_v31, 4  ;;  %v385_v53 = vmax.f32 %v383_v36, %v384_v45  ;;  %v321_v61 = vrot.slane %v307_v48, %v2916_v34 }
 0x179   :  { %v340_v54 = vcombine.high %v338_v46, %v338_v46  ;;  %v449_v55 = vsel %vm357_vm9, %v339_v47, -inf  ;;  %v456_v57 = vsel %vm357_vm9, %v338_v46, -inf  ;;  %v512_v62 = vsel %vm511_vm10, %v371_v44, %v364_v43 }
 0x17a   :  { %v444_v58 = vmax.f32 %v442_v31, %v443_v50  ;;  %v450_v59 = vrot.slane %v449_v55, 4  ;;  %v457_v60 = vrot.slane %v456_v57, 4  ;;  %v322_v0 = vcombine.high %v314_v51, %v314_v51 }
 0x17b   :  { %v463_v63 = vsel %vm357_vm9, %v340_v54, -inf  ;;  %v414_v1 = vsel %vm357_vm9, %v314_v51, -inf  ;;  %v323_v6 = vcombine.high %v321_v61, %v321_v61  ;;  %v428_v9 = vsel %vm357_vm9, %v321_v61, -inf  ;;  %v751_v61 = vld [vmem:[%s3842_s7 + $0x8] sm:$0xff] }
 0x17c   :  { %v445_v2 = vrot.slane %v444_v58, 2  ;;  %v451_v3 = vmax.f32 %v449_v55, %v450_v59  ;;  %v458_v4 = vmax.f32 %v456_v57, %v457_v60  ;;  %v464_v5 = vrot.slane %v463_v63, 4 }
 0x17d   :  { %v415_v7 = vrot.slane %v414_v1, 4  ;;  %v421_v8 = vsel %vm357_vm9, %v322_v0, -inf  ;;  %v514_v10 = vsel %vm513_vm11, %v378_v49, %v512_v62  ;;  %v429_v16 = vrot.slane %v428_v9, 4  ;;  %v753_v62 = vld [vmem:[%s3842_s7 + $0x18] sm:$0xff] }
 0x17e   :  { %v452_v11 = vrot.slane %v451_v3, 2  ;;  %v459_v12 = vrot.slane %v458_v4, 2  ;;  %v465_v13 = vmax.f32 %v463_v63, %v464_v5  ;;  %v422_v15 = vrot.slane %v421_v8, 4  ;;  %v750_v63 = vld [vmem:[%s3842_s7] sm:$0xff]  ;;  %v755_v5 = vld [vmem:[%s3842_s7 + $0x28] sm:$0xff] }
 0x17f   :  { %v416_v14 = vmax.f32 %v414_v1, %v415_v7  ;;  %v435_v17 = vsel %vm357_vm9, %v323_v6, -inf  ;;  %v399_v18 = vmax.f32 %v2931_v22, %v398_v42  ;;  %v405_v19 = vrot.slane %v2934_v28, 1  ;;  %v757_v6 = vld [vmem:[%s3842_s7 + $0x38] sm:$0xff] }
 0x180   :  { %v446_v20 = vmax.f32 %v444_v58, %v445_v2  ;;  %v413_v21 = vmax.f32 %v411_v37, %v412_v52  ;;  %v423_v24 = vmax.f32 %v421_v8, %v422_v15  ;;  %v430_v25 = vmax.f32 %v428_v9, %v429_v16 }
 0x181   :  { %v417_v23 = vrot.slane %v416_v14, 2  ;;  %v436_v26 = vrot.slane %v435_v17, 4  ;;  %v453_v27 = vmax.f32 %v451_v3, %v452_v11  ;;  %v460_v29 = vmax.f32 %v458_v4, %v459_v12  ;;  %v752_v4 = vld [vmem:[%s3842_s7 + $0x10] sm:$0xff]  ;;  %v754_v11 = vld [vmem:[%s3842_s7 + $0x20] sm:$0xff] }
 0x182   :  { %v466_v32 = vrot.slane %v465_v13, 2  ;;  %v516_v33 = vsel %vm515_vm12, %v385_v53, %v514_v10  ;;  %v424_v36 = vrot.slane %v423_v24, 2  ;;  %v431_v39 = vrot.slane %v430_v25, 2  ;;  %v756_v12 = vld [vmem:[%s3842_s7 + $0x30] sm:$0xff] }
 0x183   :  { %v418_v35 = vmax.f32 %v416_v14, %v417_v23  ;;  %v437_v40 = vmax.f32 %v435_v17, %v436_v26  ;;  %v406_v22 = vmax.f32 %v2934_v28, %v405_v19  ;;  %v447_v41 = vrot.slane %v446_v20, 1  ;;  %v759_v17 = vld [vmem:[%s3842_s7 + $0x48] sm:$0xff] }
 0x184   :  { %v518_v37 = vsel %vm517_vm13, %v2937_v38, %v516_v33  ;;  %v535_v42 = vsel %vm80_vm0, %v413_v21, 0.0  ;;  %v425_v44 = vmax.f32 %v423_v24, %v424_v36  ;;  %v432_v45 = vmax.f32 %v430_v25, %v431_v39  ;;  %v760_v33 = vld [vmem:[%s3842_s7 + $0x50] sm:$0xff]  ;;  %v765_v36 = vld [vmem:[%s3842_s7 + $0x78] sm:$0xff] }
 0x185   :  { %v419_v43 = vrot.slane %v418_v35, 1  ;;  %v438_v46 = vrot.slane %v437_v40, 2  ;;  %v454_v47 = vrot.slane %v453_v27, 1  ;;  %v461_v31 = vrot.slane %v460_v29, 1 }
 0x186   :  { %v520_v48 = vsel %vm519_vm14, %v399_v18, %v518_v37  ;;  %v467_v49 = vmax.f32 %v465_v13, %v466_v32  ;;  %v426_v50 = vrot.slane %v425_v44, 1  ;;  %v433_v51 = vrot.slane %v432_v45, 1  ;;  %v761_v18 = vld [vmem:[%s3842_s7 + $0x58] sm:$0xff] }
 0x187   :  { %v439_v52 = vmax.f32 %v437_v40, %v438_v46  ;;  %v542_v53 = vrot.slane %v535_v42, 1  ;;  %v420_v28 = vmax.f32 %v418_v35, %v419_v43  ;;  %v522_v54 = vsel %vm521_vm15, %v406_v22, %v520_v48  ;;  %v763_v35 = vld [vmem:[%s3842_s7 + $0x68] sm:$0xff]  ;;  %v764_v43 = vld [vmem:[%s3842_s7 + $0x70] sm:$0xff]  ;;  %v769_v46 = vld [vmem:[%s3842_s7 + $0x98] sm:$0xff] }
 0x188   :  { %v554_v55 = vrot.slane %v535_v42, 2  ;;  %v468_v38 = vrot.slane %v467_v49, 1  ;;  %v427_v57 = vmax.f32 %v425_v44, %v426_v50  ;;  %v434_v58 = vmax.f32 %v432_v45, %v433_v51  ;;  %v762_v42 = vld [vmem:[%s3842_s7 + $0x60] sm:$0xff]  ;;  %v767_v45 = vld [vmem:[%s3842_s7 + $0x88] sm:$0xff]  ;;  %v773_v51 = vld [vmem:[%s3842_s7 + $0xb8] sm:$0xff] }
 0x189   :  { %v440_v59 = vrot.slane %v439_v52, 1  ;;  %v2964_v60 = vsel %vm80_vm0, 0.0, %v522_v54  ;;  %v2365_v3 = vpack.c.bf16 %v753_v62, %v751_v61  ;;  %v2367_v9 = vpack.c.bf16 %v752_v4, %v750_v63  ;;  %v766_v48 = vld [vmem:[%s3842_s7 + $0x80] sm:$0xff]  ;;  %v771_v50 = vld [vmem:[%s3842_s7 + $0xa8] sm:$0xff]  ;;  %v772_v54 = vld [vmem:[%s3842_s7 + $0xb0] sm:$0xff] }
 0x18a   :  { %v541_v0 = vrot.slane %v2964_v60, 1  ;;  %v553_v1 = vrot.slane %v2964_v60, 2  ;;  %v469_v2 = vmax.f32 %v467_v49, %v468_v38  ;;  %v523_v8 = vsel %vm511_vm10, %v427_v57, %v420_v28  ;;  %v768_v49 = vld [vmem:[%s3842_s7 + $0x90] sm:$0xff]  ;;  %v770_v28 = vld [vmem:[%s3842_s7 + $0xa0] sm:$0xff]  ;;  %v777_v38 = vld [vmem:[%s3842_s7 + $0xd8] sm:$0xff] }
 0x18b   :  { %v441_v7 = vmax.f32 %v439_v52, %v440_v59  ;;  %v2369_v10 = vpack.c.bf16 %v757_v6, %v755_v5  ;;  %v448_v13 = vmax.f32 %v446_v20, %v447_v41  ;;  %v524_v14 = vsel %vm513_vm11, %v434_v58, %v523_v8  ;;  %2366 = vmatprep.subr.bf16.mxu0 %v2365_v3  ;;  %v774_v3 = vld [vmem:[%s3842_s7 + $0xc0] sm:$0xff]  ;;  %v776_v4 = vld [vmem:[%s3842_s7 + $0xd0] sm:$0xff]  ;;  %v781_v6 = vld [vmem:[%s3842_s7 + $0xf8] sm:$0xff] }
 0x18c   :  { %v543_v15 = vsel %vm101_vm2, %v541_v0, %v542_v53  ;;  %v555_v16 = vsel %vm124_vm1, %v553_v1, %v554_v55  ;;  %v455_v19 = vmax.f32 %v453_v27, %v454_v47  ;;  %v462_v21 = vmax.f32 %v460_v29, %v461_v31  ;;  %2368 = vmatpush1.bf16.msra.mxu0 %v2367_v9  ;;  %v758_v27 = vld [vmem:[%s3842_s7 + $0x40] sm:$0xff]  ;;  %v775_v55 = vld [vmem:[%s3842_s7 + $0xc8] sm:$0xff]  ;;  %v780_v9 = vld [vmem:[%s3842_s7 + $0xf0] sm:$0xff] }
 0x18d   :  { %547 = vrot.lane.b32.xlu0 %v543_v15, %s2663_s2  ;;  %2060 = vmatprep.mubr.msk.f32.mxu1 %vm559_vm3, %v555_v16  ;;  %v525_v20 = vsel %vm515_vm12, %v441_v7, %v524_v14  ;;  %v2371_v24 = vpack.c.bf16 %v756_v12, %v754_v11  ;;  %v536_v26 = vsel %vm80_vm0, %v469_v2, 0.0  ;;  %v2373_v32 = vpack.c.bf16 %v761_v18, %v759_v17  ;;  %v778_v8 = vld [vmem:[%s3842_s7 + $0xe0] sm:$0xff]  ;;  %v783_v11 = vld [vmem:[%s3842_s7 + $0x108] sm:$0xff]  ;;  %v785_v12 = vld [vmem:[%s3842_s7 + $0x118] sm:$0xff] }
 0x18e   :  { %v526_v23 = vsel %vm517_vm13, %v448_v13, %v525_v20  ;;  %2370 = vmatprep.subr.bf16.mxu0 %v2369_v10  ;;  %v545_v22 = vrot.slane %v536_v26, 1  ;;  %v2375_v41 = vpack.c.bf16 %v760_v33, %v758_v27  ;;  %v2377_v37 = vpack.c.bf16 %v765_v36, %v763_v35  ;;  %v782_v14 = vld [vmem:[%s3842_s7 + $0x100] sm:$0xff]  ;;  %v784_v15 = vld [vmem:[%s3842_s7 + $0x110] sm:$0xff]  ;;  %v787_v17 = vld [vmem:[%s3842_s7 + $0x128] sm:$0xff] }
 0x18f   :  { %v527_v25 = vsel %vm519_vm14, %v455_v19, %v526_v23  ;;  %v2379_v47 = vpack.c.bf16 %v764_v43, %v762_v42  ;;  %v2381_v31 = vpack.c.bf16 %v769_v46, %v767_v45  ;;  %v2383_v52 = vpack.c.bf16 %v768_v49, %v766_v48  ;;  %v789_v18 = vld [vmem:[%s3842_s7 + $0x138] sm:$0xff]  ;;  %v786_v20 = vld [vmem:[%s3842_s7 + $0x120] sm:$0xff]  ;;  %v792_v27 = vld [vmem:[%s3842_s7 + $0x150] sm:$0xff] }
 0x190   :  { %v528_v29 = vsel %vm521_vm15, %v462_v21, %v527_v25  ;;  %2372 = vmatpush1.bf16.msra.mxu0 %v2371_v24  ;;  %v2385_v53 = vpack.c.bf16 %v773_v51, %v771_v50  ;;  %v2387_v57 = vpack.c.bf16 %v772_v54, %v770_v28  ;;  %v2389_v58 = vpack.c.bf16 %v777_v38, %v775_v55  ;;  %v788_v21 = vld [vmem:[%s3842_s7 + $0x130] sm:$0xff]  ;;  %v791_v24 = vld [vmem:[%s3842_s7 + $0x148] sm:$0xff]  ;;  %v793_v25 = vld [vmem:[%s3842_s7 + $0x158] sm:$0xff] }
 0x191   :  { %v534_v39 = vsel %vm80_vm0, 0.0, %v528_v29  ;;  %2374 = vmatprep.subr.bf16.mxu0 %v2373_v32  ;;  %v557_v62 = vrot.slane %v536_v26, 2  ;;  %v2391_v5 = vpack.c.bf16 %v776_v4, %v774_v3  ;;  %v2395_v10 = vpack.c.bf16 %v780_v9, %v778_v8  ;;  %v790_v32 = vld [vmem:[%s3842_s7 + $0x140] sm:$0xff]  ;;  %v795_v29 = vld [vmem:[%s3842_s7 + $0x168] sm:$0xff]  ;;  %v797_v35 = vld [vmem:[%s3842_s7 + $0x178] sm:$0xff] }
 0x192   :  { %v544_v40 = vrot.slane %v534_v39, 1  ;;  %v556_v59 = vrot.slane %v534_v39, 2  ;;  %v2397_v13 = vpack.c.bf16 %v785_v12, %v783_v11  ;;  %v2399_v16 = vpack.c.bf16 %v784_v15, %v782_v14  ;;  %v798_v43 = vld [vmem:[%s3842_s7 + $0x180] sm:$0xff]  ;;  %v803_v46 = vld [vmem:[%s3842_s7 + $0x1a8] sm:$0xff]  ;;  %v804_v49 = vld [vmem:[%s3842_s7 + $0x1b0] sm:$0xff] }
 0x193   :  { %v2401_v19 = vpack.c.bf16 %v789_v18, %v787_v17  ;;  %v2403_v23 = vpack.c.bf16 %v788_v21, %v786_v20  ;;  %v2405_v26 = vpack.c.bf16 %v793_v25, %v791_v24  ;;  %v2407_v33 = vpack.c.bf16 %v792_v27, %v790_v32  ;;  %v802_v48 = vld [vmem:[%s3842_s7 + $0x1a0] sm:$0xff]  ;;  %v807_v51 = vld [vmem:[%s3842_s7 + $0x1c8] sm:$0xff]  ;;  %v808_v54 = vld [vmem:[%s3842_s7 + $0x1d0] sm:$0xff] }
 0x194   :  { %v546_v44 = vsel %vm101_vm2, %v544_v40, %v545_v22  ;;  %2376 = vmatpush1.bf16.msra.mxu0 %v2375_v41  ;;  %v558_v0 = vsel %vm124_vm1, %v556_v59, %v557_v62  ;;  %v2409_v36 = vpack.c.bf16 %v797_v35, %v795_v29  ;;  %v796_v40 = vld [vmem:[%s3842_s7 + $0x170] sm:$0xff]  ;;  %v799_v41 = vld [vmem:[%s3842_s7 + $0x188] sm:$0xff]  ;;  %v2419_v50 = vpack.c.bf16 %v804_v49, %v802_v48  ;;  %v813_v38 = vld [vmem:[%s3842_s7 + $0x1f8] sm:$0xff] }
 0x195   :  { %549 = vrot.lane.b32.xlu1 %v546_v44, %s2663_s2  ;;  %2378 = vmatprep.subr.bf16.mxu0 %v2377_v37  ;;  %v801_v37 = vld [vmem:[%s3842_s7 + $0x198] sm:$0xff]  ;;  %v800_v44 = vld [vmem:[%s3842_s7 + $0x190] sm:$0xff]  ;;  %v811_v55 = vld [vmem:[%s3842_s7 + $0x1e8] sm:$0xff]  ;;  %vm693_vm1 = vcmask 1041408   ;;  %v2664_v3 = vmov 0.0   ;;  %vm2665_vm2 = vmmov 0  }
 0x196   :  { %v2413_v42 = vpack.c.bf16 %v801_v37, %v799_v41  ;;  %v2415_v45 = vpack.c.bf16 %v800_v44, %v798_v43  ;;  %v810_v59 = vld [vmem:[%s3842_s7 + $0x1e0] sm:$0xff]  ;;  %2261 = vmatprep.subr.mxu1 %v2664_v3 }
 0x197   :  { %v1057_v4 = vld [vmem:[%s3870_s23] sm:$0x3] }
 0x198   :  { %2380 = vmatpush1.bf16.msra.mxu0 %v2379_v47  ;;  %v805_v47 = vld [vmem:[%s3842_s7 + $0x1b8] sm:$0xff] }
 0x199   :  { %2382 = vmatprep.subr.bf16.mxu0 %v2381_v31  ;;  %v2417_v31 = vpack.c.bf16 %v805_v47, %v803_v46  ;;  %v1247_v46 = vld [vmem:[%s3848_s13 + $0x80] sm:$0xff]  ;;  %v1248_v47 = vld [vmem:[%s3848_s13 + $0x88] sm:$0xff] }
 0x19c   :  { %2384 = vmatpush1.bf16.msra.mxu0 %v2383_v52  ;;  %v809_v52 = vld [vmem:[%s3842_s7 + $0x1d8] sm:$0xff] }
 0x19d   :  { %2386 = vmatprep.subr.bf16.mxu0 %v2385_v53  ;;  %v806_v53 = vld [vmem:[%s3842_s7 + $0x1c0] sm:$0xff]  ;;  %v2421_v28 = vpack.c.bf16 %v809_v52, %v807_v51 }
 0x1a0   :  { %2388 = vmatpush1.bf16.msra.mxu0 %v2387_v57  ;;  %v2423_v57 = vpack.c.bf16 %v808_v54, %v806_v53 }
 0x1a1   :  { %2390 = vmatprep.subr.bf16.mxu0 %v2389_v58  ;;  %v2425_v58 = vpack.c.bf16 %v813_v38, %v811_v55 }
 0x1a4   :  { %2392 = vmatpush1.bf16.msra.mxu0 %v2391_v5  ;;  %v1145_v5 = vld [vmem:[%s3846_s11] sm:$0x1] }
 0x1ff   :  { %v548_v61 = vpop.permute.xlu0 %547 }
 0x200   :  { %v560_v63 = vsel %vm559_vm3, %v2964_v60, %v548_v61  ;;  %v779_v60 = vld [vmem:[%s3842_s7 + $0xe8] sm:$0xff]  ;;  %v812_v61 = vld [vmem:[%s3842_s7 + $0x1f0] sm:$0xff] }
 0x201   :  { %637 = vmatmul.mubr.f32.vlgmr.msra.gmra.mrb[4].mxu1 %v560_v63  ;;  %v2393_v7 = vpack.c.bf16 %v781_v6, %v779_v60  ;;  %v2427_v62 = vpack.c.bf16 %v812_v61, %v810_v59  ;;  %v815_v63 = vld [vmem:[%s3842_s7 + $0x208] sm:$0xff]  ;;  %v1144_v60 = vld [vmem:[%s3871_s26] sm:$0x3] }
 0x202   :  { %2061 = vmatprep.mubr.msk.f32.mxu1 %vm559_vm3, %v558_v0  ;;  %v817_v0 = vld [vmem:[%s3842_s7 + $0x218] sm:$0xff]  ;;  %v2059_v6 = vld [vmem:[%s3841_s6] ss:$0 sm:$0xff] }
 0x203   :  { %2394 = vmatprep.subr.bf16.mxu0 %v2393_v7 }
 0x204   :  { %2396 = vmatpush1.bf16.msra.mxu0 %v2395_v10 }
 0x205   :  { %2398 = vmatprep.subr.bf16.mxu0 %v2397_v13 }
 0x207   :  { %v550_v1 = vpop.permute.xlu1 %549 }
 0x208   :  { %v561_v2 = vsel %vm559_vm3, %v534_v39, %v550_v1  ;;  %2400 = vmatpush1.bf16.msra.mxu0 %v2399_v16  ;;  %v794_v39 = vld [vmem:[%s3842_s7 + $0x160] sm:$0xff]  ;;  %v2429_v1 = vpack.c.bf16 %v817_v0, %v815_v63 }
 0x209   :  { %642 = vmatmul.mubr.f32.gmra.mrb[6].mxu1 %v561_v2  ;;  %2402 = vmatprep.subr.bf16.mxu0 %v2401_v19  ;;  %v2411_v22 = vpack.c.bf16 %v796_v40, %v794_v39  ;;  %v1058_v2 = vld [vmem:[%s3844_s9] sm:$0x3]  ;;  %v1360_v40 = vld [vmem:[%s3849_s14 + $0x8] sm:$0xff] }
 0x20a   :  { %2262 = vmatpush3.msk.msra.mxu1 %vm693_vm1, %v1058_v2  ;;  %2263 = vmatprep.mubr.msk.f32.mxu1 %vm2665_vm2, %v2664_v3  ;;  %v1359_v39 = vld [vmem:[%s3849_s14] sm:$0xff] }
 0x20b   :  { %2266 = vmatprep.subr.mxu1 %v2664_v3  ;;  %v2462_v37 = vpack.c.bf16 %v1360_v40, %v1359_v39 }
 0x20c   :  { %2404 = vmatpush1.bf16.msra.mxu0 %v2403_v23 }
 0x20d   :  { %2406 = vmatprep.subr.bf16.mxu0 %v2405_v26  ;;  %2264 = vmatmul.mubr.msk.f32.vlgmr.msra.gmra.mrb[8].mxu1 %vm1066_vm4, %v1057_v4 }
 0x20e   :  { %2268 = vmatprep.mubr.msk.f32.mxu1 %vm2665_vm2, %v2664_v3  ;;  %2267 = vmatpush3.msk.msra.mxu1 %vm80_vm0, %v1145_v5 }
 0x20f   :  { %2461 = vmatprep.subr.bf16.mxu1 %v2661_v56 }
 0x210   :  { %2408 = vmatpush1.bf16.msra.mxu0 %v2407_v33 }
 0x211   :  { %2410 = vmatprep.subr.bf16.mxu0 %v2409_v36  ;;  %2269 = vmatmul.mubr.msk.f32.vlgmr.msra.gmra.mrb[10].mxu1 %vm1153_vm5, %v1144_v60 }
 0x212   :  { %2275 = vmatprep.mubr.msk.f32.mxu1 %vm2665_vm2, %v2664_v3  ;;  %2463 = vmatpush3.bf16.msra.mxu1 %v2462_v37 }
 0x214   :  { %2412 = vmatpush1.bf16.msra.mxu0 %v2411_v22 }
 0x215   :  { %2414 = vmatprep.subr.bf16.mxu0 %v2413_v42 }
 0x218   :  { %2416 = vmatpush1.bf16.msra.mxu0 %v2415_v45 }
 0x219   :  { %2418 = vmatprep.subr.bf16.mxu0 %v2417_v31 }
 0x21c   :  { %2420 = vmatpush1.bf16.msra.mxu0 %v2419_v50  ;;  %v2464_v50 = vpack.c.bf16 %v1248_v47, %v1247_v46 }
 0x21d   :  { %2422 = vmatprep.subr.bf16.mxu0 %v2421_v28 }
 0x21e   :  { %2465 = vmatprep.subr.bf16.mxu1 %v2464_v50 }
 0x220   :  { %2424 = vmatpush1.bf16.msra.mxu0 %v2423_v57 }
 0x221   :  { %2426 = vmatprep.subr.bf16.mxu0 %v2425_v58 }
 0x224   :  { %2428 = vmatpush1.bf16.msra.mxu0 %v2427_v62 }
 0x225   :  { %2430 = vmatprep.subr.bf16.mxu0 %v2429_v1 }
 0x2d4   :  { %v638_v7 = vpop.f32.mrb[4].mxu1 }
 0x2d5   :  { %v639_v8 = vadd.f32 %v2059_v6, %v638_v7  ;;  %v640_v9 = vpop.f32.mrb[5].mxu1 }
 0x2d7   :  { %v647_v10 = vmax.f32 %v639_v8, 0.0 }
 0x2d9   :  { %v651_v11 = vcombine.high %v647_v10, %v647_v10  ;;  %v658_v12 = vrot.slane %v647_v10, %v2916_v34 }
 0x2db   :  { %v665_v13 = vrot.slane %v651_v11, %v2916_v34  ;;  %v666_v14 = vcombine.high %v658_v12, %v658_v12  ;;  %v694_v15 = vsel %vm693_vm1, %v658_v12, -inf }
 0x2dc   :  { %v695_v16 = vrot.slane %v694_v15, 4  ;;  %v643_v17 = vpop.f32.mrb[6].mxu1 }
 0x2dd   :  { %v667_v18 = vcombine.high %v665_v13, %v665_v13  ;;  %v701_v19 = vsel %vm693_vm1, %v666_v14, -inf  ;;  %v708_v20 = vsel %vm693_vm1, %v665_v13, -inf  ;;  %v644_v21 = vadd.f32 %v2059_v6, %v643_v17  ;;  %v645_v23 = vpop.f32.mrb[7].mxu1 }
 0x2de   :  { %v696_v24 = vmax.f32 %v694_v15, %v695_v16  ;;  %v702_v25 = vrot.slane %v701_v19, 4  ;;  %v709_v26 = vrot.slane %v708_v20, 4 }
 0x2df   :  { %v715_v32 = vsel %vm693_vm1, %v667_v18, -inf  ;;  %v648_v27 = vmax.f32 %v644_v21, 0.0 }
 0x2e0   :  { %v697_v33 = vrot.slane %v696_v24, 2  ;;  %v703_v29 = vmax.f32 %v701_v19, %v702_v25  ;;  %v710_v35 = vmax.f32 %v708_v20, %v709_v26  ;;  %v716_v36 = vrot.slane %v715_v32, 4 }
 0x2e1   :  { %v668_v22 = vcombine.high %v648_v27, %v648_v27  ;;  %v675_v41 = vrot.slane %v648_v27, %v2916_v34 }
 0x2e2   :  { %v698_v42 = vmax.f32 %v696_v24, %v697_v33  ;;  %v704_v43 = vrot.slane %v703_v29, 2  ;;  %v711_v44 = vrot.slane %v710_v35, 2  ;;  %v717_v45 = vmax.f32 %v715_v32, %v716_v36 }
 0x2e3   :  { %v682_v31 = vrot.slane %v668_v22, %v2916_v34  ;;  %v683_v48 = vcombine.high %v675_v41, %v675_v41  ;;  %v722_v49 = vsel %vm693_vm1, %v675_v41, -inf }
 0x2e4   :  { %v699_v51 = vrot.slane %v698_v42, 1  ;;  %v705_v52 = vmax.f32 %v703_v29, %v704_v43  ;;  %v712_v53 = vmax.f32 %v710_v35, %v711_v44  ;;  %v718_v28 = vrot.slane %v717_v45, 2  ;;  %v816_v43 = vld [vmem:[%s3842_s7 + $0x210] sm:$0xff] }
 0x2e5   :  { %v684_v54 = vcombine.high %v682_v31, %v682_v31  ;;  %v723_v55 = vrot.slane %v722_v49, 4  ;;  %v729_v38 = vsel %vm693_vm1, %v683_v48, -inf  ;;  %v736_v57 = vsel %vm693_vm1, %v682_v31, -inf  ;;  %v819_v31 = vld [vmem:[%s3842_s7 + $0x228] sm:$0xff]  ;;  %v821_v48 = vld [vmem:[%s3842_s7 + $0x238] sm:$0xff] }
 0x2e6   :  { %v700_v58 = vmax.f32 %v698_v42, %v699_v51  ;;  %v706_v59 = vrot.slane %v705_v52, 1  ;;  %v713_v61 = vrot.slane %v712_v53, 1  ;;  %v719_v34 = vmax.f32 %v717_v45, %v718_v28  ;;  %v814_v42 = vld [vmem:[%s3842_s7 + $0x200] sm:$0xff]  ;;  %v820_v28 = vld [vmem:[%s3842_s7 + $0x230] sm:$0xff] }
 0x2e7   :  { %v724_v62 = vmax.f32 %v722_v49, %v723_v55  ;;  %v730_v63 = vrot.slane %v729_v38, 4  ;;  %v737_v0 = vrot.slane %v736_v57, 4  ;;  %v743_v1 = vsel %vm693_vm1, %v684_v54, -inf  ;;  %v823_v54 = vld [vmem:[%s3842_s7 + $0x248] sm:$0xff]  ;;  %v825_v55 = vld [vmem:[%s3842_s7 + $0x258] sm:$0xff] }
 0x2e8   :  { %v707_v2 = vmax.f32 %v705_v52, %v706_v59  ;;  %v714_v4 = vmax.f32 %v712_v53, %v713_v61  ;;  %v744_v5 = vrot.slane %v743_v1, 4  ;;  %v720_v60 = vrot.slane %v719_v34, 1  ;;  %v818_v53 = vld [vmem:[%s3842_s7 + $0x220] sm:$0xff]  ;;  %v824_v59 = vld [vmem:[%s3842_s7 + $0x250] sm:$0xff]  ;;  %v827_v61 = vld [vmem:[%s3842_s7 + $0x268] sm:$0xff] }
 0x2e9   :  { %v725_v6 = vrot.slane %v724_v62, 2  ;;  %v731_v7 = vmax.f32 %v729_v38, %v730_v63  ;;  %v738_v8 = vmax.f32 %v736_v57, %v737_v0  ;;  %v2431_v50 = vpack.c.bf16 %v816_v43, %v814_v42  ;;  %v826_v0 = vld [vmem:[%s3842_s7 + $0x260] sm:$0xff]  ;;  %v1298_v42 = vld [vmem:[%s3848_s13 + $0x218] sm:$0xff] }
 0x2ea   :  { %v745_v9 = vmax.f32 %v743_v1, %v744_v5  ;;  %v721_v10 = vmax.f32 %v719_v34, %v720_v60  ;;  %v855_v11 = vsel %vm511_vm10, %v707_v2, %v700_v58  ;;  %v2433_v52 = vpack.c.bf16 %v821_v48, %v819_v31  ;;  %v822_v58 = vld [vmem:[%s3842_s7 + $0x240] sm:$0xff]  ;;  %v829_v34 = vld [vmem:[%s3842_s7 + $0x278] sm:$0xff]  ;;  %v828_v1 = vld [vmem:[%s3842_s7 + $0x270] sm:$0xff] }
 0x2eb   :  { %v726_v12 = vmax.f32 %v724_v62, %v725_v6  ;;  %v732_v13 = vrot.slane %v731_v7, 2  ;;  %v739_v14 = vrot.slane %v738_v8, 2  ;;  %v856_v15 = vsel %vm513_vm11, %v714_v4, %v855_v11  ;;  %v831_v2 = vld [vmem:[%s3842_s7 + $0x288] sm:$0xff]  ;;  %v833_v4 = vld [vmem:[%s3842_s7 + $0x298] sm:$0xff]  ;;  %v830_v6 = vld [vmem:[%s3842_s7 + $0x280] sm:$0xff] }
 0x2ec   :  { %v746_v16 = vrot.slane %v745_v9, 2  ;;  %v857_v21 = vsel %vm515_vm12, %v721_v10, %v856_v15  ;;  %v2435_v38 = vpack.c.bf16 %v820_v28, %v818_v53  ;;  %v2437_v57 = vpack.c.bf16 %v825_v55, %v823_v54  ;;  %v841_v15 = vld [vmem:[%s3842_s7 + $0x2d8] sm:$0xff]  ;;  %v1315_v43 = vld [vmem:[%s3848_s13 + $0x2a0] sm:$0xff]  ;;  %v1300_v31 = vld [vmem:[%s3848_s13 + $0x228] sm:$0xff]  ;;  %v1139_v54 = vpop.f32.mrb[8].mxu1 }
 0x2ed   :  { %v727_v17 = vrot.slane %v726_v12, 1  ;;  %v733_v18 = vmax.f32 %v731_v7, %v732_v13  ;;  %v740_v19 = vmax.f32 %v738_v8, %v739_v14  ;;  %v863_v33 = vsel %vm80_vm0, 0.0, %v857_v21  ;;  %v832_v7 = vld [vmem:[%s3842_s7 + $0x290] sm:$0xff]  ;;  %v835_v8 = vld [vmem:[%s3842_s7 + $0x2a8] sm:$0xff]  ;;  %v845_v21 = vld [vmem:[%s3842_s7 + $0x2f8] sm:$0xff] }
 0x2ee   :  { %v747_v20 = vmax.f32 %v745_v9, %v746_v16  ;;  %v866_v39 = vsel %vm865_vm6, %v863_v33, 0.0  ;;  %v2439_v62 = vpack.c.bf16 %v824_v59, %v822_v58  ;;  %v2441_v63 = vpack.c.bf16 %v829_v34, %v827_v61  ;;  %v837_v9 = vld [vmem:[%s3842_s7 + $0x2b8] sm:$0xff]  ;;  %v836_v13 = vld [vmem:[%s3842_s7 + $0x2b0] sm:$0xff]  ;;  %v839_v14 = vld [vmem:[%s3842_s7 + $0x2c8] sm:$0xff]  ;;  %v2265_v58 = vpop.f32.mrb[9].mxu1 }
 0x2ef   :  { %v734_v23 = vrot.slane %v733_v18, 1  ;;  %v741_v24 = vrot.slane %v740_v19, 1  ;;  %v728_v26 = vmax.f32 %v726_v12, %v727_v17  ;;  %v870_v37 = vrot.slane %v866_v39, 1  ;;  %v834_v12 = vld [vmem:[%s3842_s7 + $0x2a0] sm:$0xff]  ;;  %v1317_v48 = vld [vmem:[%s3848_s13 + $0x2b0] sm:$0xff]  ;;  %v1232_v28 = vld [vmem:[%s3848_s13 + $0x8] sm:$0xff] }
 0x2f0   :  { %v748_v25 = vrot.slane %v747_v20, 1  ;;  %v872_v45 = vrot.slane %v866_v39, 2  ;;  %v2443_v5 = vpack.c.bf16 %v828_v1, %v826_v0  ;;  %v2445_v60 = vpack.c.bf16 %v833_v4, %v831_v2  ;;  %v1231_v53 = vld [vmem:[%s3848_s13] sm:$0xff]  ;;  %v1249_v55 = vld [vmem:[%s3848_s13 + $0x90] sm:$0xff]  ;;  %v1252_v1 = vld [vmem:[%s3848_s13 + $0xa8] sm:$0xff] }
 0x2f1   :  { %v735_v32 = vmax.f32 %v733_v18, %v734_v23  ;;  %v742_v27 = vmax.f32 %v740_v19, %v741_v24  ;;  %v2447_v10 = vpack.c.bf16 %v832_v7, %v830_v6  ;;  %v2449_v11 = vpack.c.bf16 %v837_v9, %v835_v8  ;;  %v838_v18 = vld [vmem:[%s3842_s7 + $0x2c0] sm:$0xff]  ;;  %v840_v19 = vld [vmem:[%s3842_s7 + $0x2d0] sm:$0xff]  ;;  %v1254_v7 = vld [vmem:[%s3848_s13 + $0xb8] sm:$0xff] }
 0x2f2   :  { %v749_v29 = vmax.f32 %v747_v20, %v748_v25  ;;  %v2451_v16 = vpack.c.bf16 %v836_v13, %v834_v12  ;;  %v2453_v17 = vpack.c.bf16 %v841_v15, %v839_v14  ;;  %v843_v20 = vld [vmem:[%s3842_s7 + $0x2e8] sm:$0xff]  ;;  %v2455_v23 = vpack.c.bf16 %v840_v19, %v838_v18  ;;  %v842_v25 = vld [vmem:[%s3842_s7 + $0x2e0] sm:$0xff]  ;;  %v1253_v6 = vld [vmem:[%s3848_s13 + $0xb0] sm:$0xff] }
 0x2f3   :  { %v858_v35 = vsel %vm511_vm10, %v735_v32, %v728_v26  ;;  %v2457_v24 = vpack.c.bf16 %v845_v21, %v843_v20  ;;  %v844_v26 = vld [vmem:[%s3842_s7 + $0x2f0] sm:$0xff]  ;;  %v1311_v32 = vld [vmem:[%s3848_s13 + $0x280] sm:$0xff]  ;;  %v2466_v59 = vpack.c.bf16 %v1232_v28, %v1231_v53  ;;  %v2476_v9 = vpack.c.bf16 %v1254_v7, %v1253_v6  ;;  %v1302_v14 = vld [vmem:[%s3848_s13 + $0x238] sm:$0xff]  ;;  %v1226_v6 = vpop.f32.mrb[10].mxu1 }
 0x2f4   :  { %v859_v36 = vsel %vm513_vm11, %v742_v27, %v858_v35  ;;  %v1312_v27 = vld [vmem:[%s3848_s13 + $0x288] sm:$0xff]  ;;  %v2459_v33 = vpack.c.bf16 %v844_v26, %v842_v25  ;;  %v1295_v35 = vld [vmem:[%s3848_s13 + $0x200] sm:$0xff]  ;;  %v1301_v13 = vld [vmem:[%s3848_s13 + $0x230] sm:$0xff]  ;;  %v2270_v7 = vpop.f32.mrb[11].mxu1 }
 0x2f5   :  { %v860_v40 = vsel %vm515_vm12, %v749_v29, %v859_v36  ;;  %v2528_v29 = vpack.c.bf16 %v1312_v27, %v1311_v32  ;;  %v1296_v36 = vld [vmem:[%s3848_s13 + $0x208] sm:$0xff]  ;;  %v1251_v0 = vld [vmem:[%s3848_s13 + $0xa0] sm:$0xff]  ;;  %v2542_v15 = vpack.c.bf16 %v1302_v14, %v1301_v13 }
 0x2f6   :  { %v864_v22 = vsel %vm80_vm0, 0.0, %v860_v40  ;;  %v1314_v40 = vld [vmem:[%s3848_s13 + $0x298] sm:$0xff]  ;;  %vm1361_vm0 = vcmask 130048   ;;  %v2472_v4 = vpack.c.bf16 %v1252_v1, %v1251_v0  ;;  %v1239_v19 = vld [vmem:[%s3848_s13 + $0x40] sm:$0xff]  ;;  %v1240_v20 = vld [vmem:[%s3848_s13 + $0x48] sm:$0xff] }
 0x2f7   :  { %v867_v41 = vsel %vm865_vm6, %v864_v22, 0.0  ;;  %v2530_v22 = vpack.c.bf16 %v1296_v36, %v1295_v35  ;;  %v1319_v21 = vld [vmem:[%s3848_s13 + $0x2c0] sm:$0xff]  ;;  %v1304_v26 = vld [vmem:[%s3848_s13 + $0x248] sm:$0xff]  ;;  %v1241_v36 = vld [vmem:[%s3848_s13 + $0x50] sm:$0xff] }
 0x2f8   :  { %v871_v44 = vrot.slane %v867_v41, 1  ;;  %v873_v46 = vrot.slane %v867_v41, 2  ;;  %v2062_v47 = vcombine.low %v866_v39, %v867_v41  ;;  %v1313_v39 = vld [vmem:[%s3848_s13 + $0x290] sm:$0xff]  ;;  %v1303_v25 = vld [vmem:[%s3848_s13 + $0x240] sm:$0xff]  ;;  %v1308_v53 = vld [vmem:[%s3848_s13 + $0x268] sm:$0xff] }
 0x2f9   :  { %v2532_v41 = vpack.c.bf16 %v1314_v40, %v1313_v39  ;;  %v2546_v27 = vpack.c.bf16 %v1304_v26, %v1303_v25  ;;  %v1242_v39 = vld [vmem:[%s3848_s13 + $0x58] sm:$0xff]  ;;  %v1321_v40 = vld [vmem:[%s3848_s13 + $0x2d0] sm:$0xff]  ;;  %v1288_v7 = vld [vmem:[%s3848_s13 + $0x1c8] sm:$0xff] }
 0x2fa   :  { %v2063_v49 = vcombine.low %v870_v37, %v871_v44  ;;  %v3253_v51 = vcombine.low %v872_v45, %v873_v46  ;;  %v1297_v37 = vld [vmem:[%s3848_s13 + $0x210] sm:$0xff]  ;;  %v1316_v44 = vld [vmem:[%s3848_s13 + $0x2a8] sm:$0xff]  ;;  %v1310_v1 = vld [vmem:[%s3848_s13 + $0x278] sm:$0xff] }
 0x2fb   :  { %v2534_v45 = vpack.c.bf16 %v1298_v42, %v1297_v37  ;;  %v2536_v46 = vpack.c.bf16 %v1316_v44, %v1315_v43  ;;  %v1305_v37 = vld [vmem:[%s3848_s13 + $0x250] sm:$0xff]  ;;  %v1306_v42 = vld [vmem:[%s3848_s13 + $0x258] sm:$0xff] }
 0x2fc   :  { %957 = vmatprep.mubr.f32.mxu0 %v2063_v49  ;;  %v1318_v49 = vld [vmem:[%s3848_s13 + $0x2b8] sm:$0xff]  ;;  %v2550_v44 = vpack.c.bf16 %v1306_v42, %v1305_v37  ;;  %v1309_v0 = vld [vmem:[%s3848_s13 + $0x270] sm:$0xff]  ;;  %v1264_v37 = vld [vmem:[%s3848_s13 + $0x108] sm:$0xff] }
 0x2fd   :  { %958 = vmatmul.mubr.f32.vlgmr.msra.gmra.mrb[0].mxu0 %v2062_v47  ;;  %v1299_v47 = vld [vmem:[%s3848_s13 + $0x220] sm:$0xff]  ;;  %v1281_v42 = vld [vmem:[%s3848_s13 + $0x190] sm:$0xff] }
 0x2fe   :  { %2432 = vmatpush1.bf16.msra.mxu0 %v2431_v50  ;;  %1028 = vmatprep.mubr.f32.mxu0 %v2664_v3  ;;  %v2538_v50 = vpack.c.bf16 %v1300_v31, %v1299_v47  ;;  %v1243_v31 = vld [vmem:[%s3848_s13 + $0x60] sm:$0xff] }
 0x2ff   :  { %2434 = vmatprep.subr.bf16.mxu0 %v2433_v52  ;;  %v2064_v52 = vld [vmem:[%s3845_s10] ss:$0 sm:$0xff] }
 0x302   :  { %2436 = vmatpush1.bf16.msra.mxu0 %v2435_v38  ;;  %v1250_v38 = vld [vmem:[%s3848_s13 + $0x98] sm:$0xff] }
 0x303   :  { %2438 = vmatprep.subr.bf16.mxu0 %v2437_v57  ;;  %v1140_v57 = vadd.f32 %v2064_v52, %v1139_v54  ;;  %v2468_v34 = vpack.c.bf16 %v1250_v38, %v1249_v55  ;;  %v1307_v52 = vld [vmem:[%s3848_s13 + $0x260] sm:$0xff]  ;;  %v1261_v55 = vld [vmem:[%s3848_s13 + $0xf0] sm:$0xff]  ;;  %v1262_v38 = vld [vmem:[%s3848_s13 + $0xf8] sm:$0xff] }
 0x304   :  { %v2554_v54 = vpack.c.bf16 %v1308_v53, %v1307_v52  ;;  %v2492_v58 = vpack.c.bf16 %v1262_v38, %v1261_v55 }
 0x305   :  { %v1143_v61 = vmax.f32 %v1140_v57, 0.0  ;;  %v1245_v57 = vld [vmem:[%s3848_s13 + $0x70] sm:$0xff] }
 0x306   :  { %2440 = vmatpush1.bf16.msra.mxu0 %v2439_v62  ;;  %v1233_v62 = vld [vmem:[%s3848_s13 + $0x10] sm:$0xff] }
 0x307   :  { %2442 = vmatprep.subr.bf16.mxu0 %v2441_v63  ;;  %v1234_v63 = vld [vmem:[%s3848_s13 + $0x18] sm:$0xff]  ;;  %2276 = vmatmul.mubr.msk.f32.vlgmr.msra.gmra.mrb[12].mxu1 %vm1361_vm0, %v1143_v61  ;;  %v1325_v61 = vld [vmem:[%s3848_s13 + $0x2f0] sm:$0xff] }
 0x308   :  { %2467 = vmatpush3.bf16.msra.mxu1 %v2466_v59  ;;  %v2470_v2 = vpack.c.bf16 %v1234_v63, %v1233_v62  ;;  %v1246_v59 = vld [vmem:[%s3848_s13 + $0x78] sm:$0xff] }
 0x309   :  { %2469 = vmatprep.subr.bf16.mxu1 %v2468_v34  ;;  %v1326_v34 = vld [vmem:[%s3848_s13 + $0x2f8] sm:$0xff]  ;;  %v2494_v62 = vpack.c.bf16 %v1246_v59, %v1245_v57  ;;  %v1283_v57 = vld [vmem:[%s3848_s13 + $0x1a0] sm:$0xff] }
 0x30a   :  { %2444 = vmatpush1.bf16.msra.mxu0 %v2443_v5  ;;  %v1235_v5 = vld [vmem:[%s3848_s13 + $0x20] sm:$0xff]  ;;  %v2556_v63 = vpack.c.bf16 %v1326_v34, %v1325_v61 }
 0x30b   :  { %2446 = vmatprep.subr.bf16.mxu0 %v2445_v60  ;;  %v1236_v60 = vld [vmem:[%s3848_s13 + $0x28] sm:$0xff] }
 0x30c   :  { %2471 = vmatpush3.bf16.msra.mxu1 %v2470_v2  ;;  %v2474_v8 = vpack.c.bf16 %v1236_v60, %v1235_v5  ;;  %v2558_v2 = vpack.c.bf16 %v1310_v1, %v1309_v0  ;;  %v1280_v5 = vld [vmem:[%s3848_s13 + $0x188] sm:$0xff]  ;;  %v1285_v0 = vld [vmem:[%s3848_s13 + $0x1b0] sm:$0xff]  ;;  %v1286_v1 = vld [vmem:[%s3848_s13 + $0x1b8] sm:$0xff] }
 0x30d   :  { %2473 = vmatprep.subr.bf16.mxu1 %v2472_v4  ;;  %v1279_v4 = vld [vmem:[%s3848_s13 + $0x180] sm:$0xff] }
 0x30e   :  { %2448 = vmatpush1.bf16.msra.mxu0 %v2447_v10  ;;  %v1237_v10 = vld [vmem:[%s3848_s13 + $0x30] sm:$0xff]  ;;  %v2496_v60 = vpack.c.bf16 %v1280_v5, %v1279_v4  ;;  %v2508_v4 = vpack.c.bf16 %v1286_v1, %v1285_v0  ;;  %v1336_v0 = vld [vmem:[%s3848_s13 + $0x348] sm:$0xff] }
 0x30f   :  { %2450 = vmatprep.subr.bf16.mxu0 %v2449_v11  ;;  %v1238_v11 = vld [vmem:[%s3848_s13 + $0x38] sm:$0xff]  ;;  %v1269_v5 = vld [vmem:[%s3848_s13 + $0x130] sm:$0xff] }
 0x310   :  { %2475 = vmatpush3.bf16.msra.mxu1 %v2474_v8  ;;  %v2478_v12 = vpack.c.bf16 %v1238_v11, %v1237_v10  ;;  %v879_v8 = vsub.s32 0, %v2907_v30  ;;  %v883_v10 = vsub.s32 1, %v2907_v30  ;;  %v2666_v11 = vmov 1935823168   ;;  %v1353_v1 = vld [vmem:[%s3848_s13 + $0x3d0] sm:$0xff] }
 0x311   :  { %2477 = vmatprep.subr.bf16.mxu1 %v2476_v9  ;;  %v846_v9 = vld [vmem:[%s3843_s8] sm:$0x3] }
 0x312   :  { %2452 = vmatpush1.bf16.msra.mxu0 %v2451_v16  ;;  %v1255_v16 = vld [vmem:[%s3848_s13 + $0xc0] sm:$0xff]  ;;  %v880_v13 = vrot.slane %v846_v9, %v879_v8  ;;  %v884_v14 = vrot.slane %v846_v9, %v883_v10 }
 0x313   :  { %2454 = vmatprep.subr.bf16.mxu0 %v2453_v17  ;;  %v1256_v17 = vld [vmem:[%s3848_s13 + $0xc8] sm:$0xff]  ;;  %v1271_v10 = vld [vmem:[%s3848_s13 + $0x140] sm:$0xff] }
 0x314   :  { %2479 = vmatpush3.bf16.msra.mxu1 %v2478_v12  ;;  %v2480_v18 = vpack.c.bf16 %v1256_v17, %v1255_v16  ;;  %v1044_v12 = vunpack.c.l.s4 %v2666_v11  ;;  %v2667_v17 = vmov 1966171168   ;;  %v1272_v11 = vld [vmem:[%s3848_s13 + $0x148] sm:$0xff] }
 0x316   :  { %2456 = vmatpush1.bf16.msra.mxu0 %v2455_v23  ;;  %v2482_v23 = vpack.c.bf16 %v1240_v20, %v1239_v19  ;;  %2481 = vmatprep.subr.bf16.mxu1 %v2480_v18  ;;  %v1045_v16 = vunpack.c.0.s8 %v1044_v12  ;;  %v1440_v18 = vunpack.c.l.s4 %v2667_v17  ;;  %v1289_v12 = vld [vmem:[%s3848_s13 + $0x1d0] sm:$0xff]  ;;  %v1274_v17 = vld [vmem:[%s3848_s13 + $0x158] sm:$0xff] }
 0x317   :  { %2458 = vmatprep.subr.bf16.mxu0 %v2457_v24  ;;  %v1320_v24 = vld [vmem:[%s3848_s13 + $0x2c8] sm:$0xff] }
 0x318   :  { %v2544_v32 = vpack.c.bf16 %v1320_v24, %v1319_v21  ;;  %2483 = vmatpush3.bf16.msra.mxu1 %v2482_v23  ;;  %v1048_v25 = vsub.s32 %v1045_v16, %v2907_v30  ;;  %v1441_v26 = vunpack.c.0.s8 %v1440_v18  ;;  %v1273_v16 = vld [vmem:[%s3848_s13 + $0x150] sm:$0xff]  ;;  %v1291_v18 = vld [vmem:[%s3848_s13 + $0x1e0] sm:$0xff] }
 0x31a   :  { %2460 = vmatpush1.bf16.msra.mxu0 %v2459_v33  ;;  %v1257_v33 = vld [vmem:[%s3848_s13 + $0xd0] sm:$0xff] }
 0x31b   :  { %2529 = vmatprep.subr.bf16.mxu0 %v2528_v29  ;;  %v1258_v29 = vld [vmem:[%s3848_s13 + $0xd8] sm:$0xff] }
 0x31c   :  { %v2484_v35 = vpack.c.bf16 %v1258_v29, %v1257_v33 }
 0x31d   :  { %1029 = vmatmul.mubr.f32.vlgmr.msra.gmra.mrb[0].mxu0 %v3253_v51  ;;  %v2540_v51 = vpack.c.bf16 %v1318_v49, %v1317_v48  ;;  %v1244_v48 = vld [vmem:[%s3848_s13 + $0x68] sm:$0xff]  ;;  %v1323_v49 = vld [vmem:[%s3848_s13 + $0x2e0] sm:$0xff] }
 0x31e   :  { %2531 = vmatpush3.bf16.msra.mxu0 %v2530_v22  ;;  %v2486_v22 = vpack.c.bf16 %v1242_v39, %v1241_v36  ;;  %2485 = vmatprep.subr.bf16.mxu1 %v2484_v35  ;;  %v1444_v35 = vsub.s32 %v1441_v26, %v2907_v30  ;;  %v2067_v30 = vld [vmem:[%s3847_s12] ss:$0 sm:$0xff]  ;;  %v1294_v26 = vld [vmem:[%s3848_s13 + $0x1f8] sm:$0xff] }
 0x31f   :  { %2533 = vmatprep.subr.bf16.mxu0 %v2532_v41  ;;  %v1322_v41 = vld [vmem:[%s3848_s13 + $0x2d8] sm:$0xff] }
 0x320   :  { %v2548_v43 = vpack.c.bf16 %v1322_v41, %v1321_v40  ;;  %2487 = vmatpush3.bf16.msra.mxu1 %v2486_v22  ;;  %v1263_v41 = vld [vmem:[%s3848_s13 + $0x100] sm:$0xff] }
 0x322   :  { %2535 = vmatpush3.bf16.msra.mxu0 %v2534_v45  ;;  %v1259_v45 = vld [vmem:[%s3848_s13 + $0xe0] sm:$0xff] }
 0x323   :  { %2537 = vmatprep.subr.bf16.mxu0 %v2536_v46  ;;  %v1260_v46 = vld [vmem:[%s3848_s13 + $0xe8] sm:$0xff] }
 0x324   :  { %v2488_v47 = vpack.c.bf16 %v1260_v46, %v1259_v45  ;;  %v1282_v45 = vld [vmem:[%s3848_s13 + $0x198] sm:$0xff]  ;;  %v1775_v46 = vld [vmem:[%s3850_s15] sm:$0xff] }
 0x325   :  { %v2500_v53 = vpack.c.bf16 %v1282_v45, %v1281_v42  ;;  %v1346_v42 = vld [vmem:[%s3848_s13 + $0x398] sm:$0xff]  ;;  %v1329_v45 = vld [vmem:[%s3848_s13 + $0x310] sm:$0xff] }
 0x326   :  { %2539 = vmatpush3.bf16.msra.mxu0 %v2538_v50  ;;  %v2490_v50 = vpack.c.bf16 %v1244_v48, %v1243_v31  ;;  %2489 = vmatprep.subr.bf16.mxu1 %v2488_v47  ;;  %v1776_v47 = vld [vmem:[%s3850_s15 + $0x8] sm:$0xff] }
 0x327   :  { %2541 = vmatprep.subr.bf16.mxu0 %v2540_v51  ;;  %v1324_v51 = vld [vmem:[%s3848_s13 + $0x2e8] sm:$0xff]  ;;  %v2593_v55 = vpack.c.bf16 %v1776_v47, %v1775_v46  ;;  %v1330_v46 = vld [vmem:[%s3848_s13 + $0x318] sm:$0xff] }
 0x328   :  { %v2552_v28 = vpack.c.bf16 %v1324_v51, %v1323_v49  ;;  %2491 = vmatpush3.bf16.msra.mxu1 %v2490_v50  ;;  %v2498_v49 = vpack.c.bf16 %v1264_v37, %v1263_v41  ;;  %v1227_v50 = vadd.f32 %v2067_v30, %v1226_v6  ;;  %v1287_v6 = vld [vmem:[%s3848_s13 + $0x1c0] sm:$0xff]  ;;  %v1328_v41 = vld [vmem:[%s3848_s13 + $0x308] sm:$0xff]  ;;  %v1345_v37 = vld [vmem:[%s3848_s13 + $0x390] sm:$0xff] }
 0x329   :  { %2493 = vmatprep.subr.bf16.mxu1 %v2492_v58  ;;  %v1284_v58 = vld [vmem:[%s3848_s13 + $0x1a8] sm:$0xff]  ;;  %v2512_v9 = vpack.c.bf16 %v1288_v7, %v1287_v6  ;;  %v1338_v6 = vld [vmem:[%s3848_s13 + $0x358] sm:$0xff]  ;;  %v1355_v7 = vld [vmem:[%s3848_s13 + $0x3e0] sm:$0xff] }
 0x32a   :  { %2543 = vmatpush3.bf16.msra.mxu0 %v2542_v15  ;;  %v1230_v61 = vmax.f32 %v1227_v50, 0.0  ;;  %v2504_v34 = vpack.c.bf16 %v1284_v58, %v1283_v57  ;;  %v2566_v50 = vpack.c.bf16 %v1330_v46, %v1329_v45  ;;  %v1333_v57 = vld [vmem:[%s3848_s13 + $0x330] sm:$0xff]  ;;  %v1334_v58 = vld [vmem:[%s3848_s13 + $0x338] sm:$0xff] }
 0x32b   :  { %2545 = vmatprep.subr.bf16.mxu0 %v2544_v32 }
 0x32c   :  { %2495 = vmatpush3.bf16.msra.mxu1 %v2494_v62  ;;  %v1267_v62 = vld [vmem:[%s3848_s13 + $0x120] sm:$0xff] }
 0x32d   :  { %2497 = vmatprep.subr.bf16.mxu1 %v2496_v60  ;;  %v1270_v60 = vld [vmem:[%s3848_s13 + $0x138] sm:$0xff] }
 0x32e   :  { %2547 = vmatpush3.bf16.msra.mxu0 %v2546_v27  ;;  %v2510_v8 = vpack.c.bf16 %v1270_v60, %v1269_v5  ;;  %v1337_v60 = vld [vmem:[%s3848_s13 + $0x350] sm:$0xff] }
 0x32f   :  { %2549 = vmatprep.subr.bf16.mxu0 %v2548_v43 }
 0x332   :  { %2551 = vmatpush3.bf16.msra.mxu0 %v2550_v44 }
 0x333   :  { %2553 = vmatprep.subr.bf16.mxu0 %v2552_v28  ;;  %v1265_v28 = vld [vmem:[%s3848_s13 + $0x110] sm:$0xff] }
 0x336   :  { %2555 = vmatpush3.bf16.msra.mxu0 %v2554_v54  ;;  %v1266_v54 = vld [vmem:[%s3848_s13 + $0x118] sm:$0xff] }
 0x337   :  { %2557 = vmatprep.subr.bf16.mxu0 %v2556_v63  ;;  %v2502_v59 = vpack.c.bf16 %v1266_v54, %v1265_v28  ;;  %v1268_v63 = vld [vmem:[%s3848_s13 + $0x128] sm:$0xff]  ;;  %v1349_v28 = vld [vmem:[%s3848_s13 + $0x3b0] sm:$0xff]  ;;  %v1350_v54 = vld [vmem:[%s3848_s13 + $0x3b8] sm:$0xff] }
 0x33a   :  { %2559 = vmatpush3.bf16.msra.mxu0 %v2558_v2  ;;  %v2506_v2 = vpack.c.bf16 %v1268_v63, %v1267_v62  ;;  %v1335_v63 = vld [vmem:[%s3848_s13 + $0x340] sm:$0xff] }
 0x33b   :  { %2592 = vmatprep.subr.bf16.mxu0 %v2661_v56 }
 0x3f0   :  { %v1030_v15 = vpop.f32.mrb[0].mxu0 }
 0x3f1   :  { %v2619_v19 = vadd.f32 %v1030_v15, %v880_v13  ;;  %v1032_v20 = vpop.f32.mrb[1].mxu0  ;;  %v1290_v13 = vld [vmem:[%s3848_s13 + $0x1d8] sm:$0xff] }
 0x3f2   :  { %v2620_v21 = vadd.f32 %v1032_v20, %v884_v14  ;;  %v2514_v14 = vpack.c.bf16 %v1272_v11, %v1271_v10  ;;  %v2516_v15 = vpack.c.bf16 %v1290_v13, %v1289_v12  ;;  %v2518_v20 = vpack.c.bf16 %v1274_v17, %v1273_v16  ;;  %v1339_v11 = vld [vmem:[%s3848_s13 + $0x360] sm:$0xff]  ;;  %v1340_v12 = vld [vmem:[%s3848_s13 + $0x368] sm:$0xff]  ;;  %v1431_v13 = vpop.f32.mrb[12].mxu1 }
 0x3f3   :  { %v1035_v23 = vmax.f32 %v2619_v19, 0.0  ;;  %v1292_v19 = vld [vmem:[%s3848_s13 + $0x1e8] sm:$0xff]  ;;  %v2277_v16 = vpop.f32.mrb[13].mxu1  ;;  %v2586_v17 = vpack.c.bf16 %v1340_v12, %v1339_v11 }
 0x3f4   :  { %v1036_v24 = vmax.f32 %v2620_v21, 0.0  ;;  %v2520_v21 = vpack.c.bf16 %v1292_v19, %v1291_v18  ;;  %v1341_v19 = vld [vmem:[%s3848_s13 + $0x370] sm:$0xff] }
 0x3f6   :  { %v1039_v32 = vcombine.low %v1035_v23, %v1036_v24  ;;  %v1040_v27 = vcombine.high %v1035_v23, %v1036_v24  ;;  %v1275_v23 = vld [vmem:[%s3848_s13 + $0x160] sm:$0xff]  ;;  %v1276_v24 = vld [vmem:[%s3848_s13 + $0x168] sm:$0xff] }
 0x3f8   :  { %v1049_v33 = vrot.slane %v1039_v32, %v1048_v25  ;;  %v1056_v29 = vrot.slane %v1040_v27, %v1048_v25  ;;  %v1293_v25 = vld [vmem:[%s3848_s13 + $0x1f0] sm:$0xff]  ;;  %v2522_v32 = vpack.c.bf16 %v1276_v24, %v1275_v23  ;;  %v1860_v24 = vld [vmem:[%s3852_s17] sm:$0xff] }
 0x3f9   :  { %v2524_v27 = vpack.c.bf16 %v1294_v26, %v1293_v25  ;;  %v1861_v25 = vld [vmem:[%s3852_s17 + $0x8] sm:$0xff] }
 0x3fa   :  { %v1437_v36 = vcombine.low %v1049_v33, %v1056_v29  ;;  %v1438_v39 = vcombine.high %v1049_v33, %v1056_v29  ;;  %v1277_v33 = vld [vmem:[%s3848_s13 + $0x170] sm:$0xff]  ;;  %v1278_v29 = vld [vmem:[%s3848_s13 + $0x178] sm:$0xff]  ;;  %v2596_v26 = vpack.c.bf16 %v1861_v25, %v1860_v24 }
 0x3fc   :  { %v1445_v40 = vrot.slane %v1437_v36, %v1444_v35  ;;  %v1452_v22 = vrot.slane %v1438_v39, %v1444_v35  ;;  %v1344_v36 = vld [vmem:[%s3848_s13 + $0x388] sm:$0xff]  ;;  %v2526_v39 = vpack.c.bf16 %v1278_v29, %v1277_v33  ;;  %v1864_v33 = vld [vmem:[%s3852_s17 + $0x20] sm:$0xff] }
 0x3fd   :  { %v1865_v29 = vld [vmem:[%s3852_s17 + $0x28] sm:$0xff] }
 0x3fe   :  { %v1453_v43 = vcombine.high %v1445_v40, %v1445_v40  ;;  %v1454_v44 = vcombine.high %v1452_v22, %v1452_v22  ;;  %v3562_v51 = vrot.slane %v1445_v40, %v1444_v35  ;;  %v3564_v52 = vrot.slane %v1452_v22, %v1444_v35  ;;  %v1327_v22 = vld [vmem:[%s3848_s13 + $0x300] sm:$0xff] }
 0x3ff   :  { %v2562_v30 = vpack.c.bf16 %v1328_v41, %v1327_v22 }
 0x400   :  { %v1475_v31 = vrot.slane %v1453_v43, %v1444_v35  ;;  %v3560_v48 = vrot.slane %v1454_v44, %v1444_v35  ;;  %v1343_v35 = vld [vmem:[%s3848_s13 + $0x380] sm:$0xff]  ;;  %v1483_v43 = vcombine.high %v3562_v51, %v3562_v51  ;;  %v2564_v44 = vpack.c.bf16 %v1346_v42, %v1345_v37 }
 0x401   :  { %v2560_v40 = vpack.c.bf16 %v1344_v36, %v1343_v35  ;;  %v1484_v23 = vcombine.high %v3564_v52, %v3564_v52  ;;  %v2602_v35 = vpack.c.bf16 %v1865_v29, %v1864_v33  ;;  %v1866_v36 = vld [vmem:[%s3852_s17 + $0x30] sm:$0xff] }
 0x402   :  { %1559 = vmatprep.mubr.f32.mxu1 %v1475_v31  ;;  %1699 = vmatprep.mubr.f32.mxu0 %v3560_v48  ;;  %v1485_v38 = vcombine.high %v1475_v31, %v1475_v31  ;;  %v1486_v47 = vcombine.high %v3560_v48, %v3560_v48  ;;  %v1347_v31 = vld [vmem:[%s3848_s13 + $0x3a0] sm:$0xff]  ;;  %v1332_v48 = vld [vmem:[%s3848_s13 + $0x328] sm:$0xff] }
 0x403   :  { %1560 = vmatmul.mubr.f32.vlgmr.msra.gmra.mrb[14].mxu1 %v3562_v51  ;;  %1700 = vmatmul.mubr.f32.vlgmr.msra.gmra.mrb[2].mxu0 %v3564_v52  ;;  %v1863_v52 = vld [vmem:[%s3852_s17 + $0x18] sm:$0xff] }
 0x404   :  { %2499 = vmatpush3.bf16.msra.mxu1 %v2498_v49  ;;  %1629 = vmatprep.mubr.f32.mxu1 %v1485_v38  ;;  %v1348_v49 = vld [vmem:[%s3848_s13 + $0x3a8] sm:$0xff]  ;;  %v2572_v38 = vpack.c.bf16 %v1350_v54, %v1349_v28 }
 0x405   :  { %2501 = vmatprep.subr.bf16.mxu1 %v2500_v53  ;;  %2594 = vmatpush3.bf16.msra.mxu0 %v2593_v55  ;;  %v2568_v51 = vpack.c.bf16 %v1348_v49, %v1347_v31  ;;  %v1331_v53 = vld [vmem:[%s3848_s13 + $0x320] sm:$0xff] }
 0x406   :  { %2282 = vmatprep.mubr.msk.f32.mxu0 %vm2665_vm2, %v2664_v3  ;;  %2595 = vmatprep.subr.bf16.mxu0 %v2661_v56  ;;  %v2570_v55 = vpack.c.bf16 %v1332_v48, %v1331_v53 }
 0x408   :  { %2503 = vmatpush3.bf16.msra.mxu1 %v2502_v59  ;;  %2283 = vmatmul.mubr.msk.f32.vlgmr.msra.gmra.mrb[4].mxu0 %vm1361_vm0, %v1230_v61  ;;  %v1351_v59 = vld [vmem:[%s3848_s13 + $0x3c0] sm:$0xff]  ;;  %v1352_v61 = vld [vmem:[%s3848_s13 + $0x3c8] sm:$0xff] }
 0x409   :  { %2505 = vmatprep.subr.bf16.mxu1 %v2504_v34  ;;  %2301 = vmatprep.mubr.msk.f32.mxu0 %vm2665_vm2, %v2664_v3  ;;  %v2574_v34 = vpack.c.bf16 %v1334_v58, %v1333_v57  ;;  %v2576_v62 = vpack.c.bf16 %v1352_v61, %v1351_v59  ;;  %v1949_v57 = vld [vmem:[%s3854_s19] sm:$0xff]  ;;  %v1950_v58 = vld [vmem:[%s3854_s19 + $0x8] sm:$0xff] }
 0x40a   :  { %2597 = vmatpush3.bf16.msra.mxu0 %v2596_v26  ;;  %v2608_v61 = vpack.c.bf16 %v1950_v58, %v1949_v57 }
 0x40b   :  { %2598 = vmatprep.subr.bf16.mxu0 %v2661_v56 }
 0x40c   :  { %2507 = vmatpush3.bf16.msra.mxu1 %v2506_v2  ;;  %v1354_v2 = vld [vmem:[%s3848_s13 + $0x3d8] sm:$0xff] }
 0x40d   :  { %2509 = vmatprep.subr.bf16.mxu1 %v2508_v4  ;;  %v2578_v4 = vpack.c.bf16 %v1336_v0, %v1335_v63  ;;  %v2580_v5 = vpack.c.bf16 %v1354_v2, %v1353_v1  ;;  %v1952_v63 = vld [vmem:[%s3854_s19 + $0x18] sm:$0xff]  ;;  %v1953_v1 = vld [vmem:[%s3854_s19 + $0x20] sm:$0xff]  ;;  %v1954_v2 = vld [vmem:[%s3854_s19 + $0x28] sm:$0xff] }
 0x410   :  { %2511 = vmatpush3.bf16.msra.mxu1 %v2510_v8  ;;  %v1356_v8 = vld [vmem:[%s3848_s13 + $0x3e8] sm:$0xff] }
 0x411   :  { %2513 = vmatprep.subr.bf16.mxu1 %v2512_v9  ;;  %v2582_v9 = vpack.c.bf16 %v1338_v6, %v1337_v60  ;;  %v2584_v10 = vpack.c.bf16 %v1356_v8, %v1355_v7  ;;  %v2073_v6 = vld [vmem:[%s3853_s18] ss:$0 sm:$0xff] }
 0x414   :  { %2515 = vmatpush3.bf16.msra.mxu1 %v2514_v14  ;;  %v1357_v14 = vld [vmem:[%s3848_s13 + $0x3f0] sm:$0xff] }
 0x415   :  { %2517 = vmatprep.subr.bf16.mxu1 %v2516_v15  ;;  %v1358_v15 = vld [vmem:[%s3848_s13 + $0x3f8] sm:$0xff] }
 0x416   :  { %v2588_v18 = vpack.c.bf16 %v1358_v15, %v1357_v14 }
 0x418   :  { %2519 = vmatpush3.bf16.msra.mxu1 %v2518_v20  ;;  %v1342_v20 = vld [vmem:[%s3848_s13 + $0x378] sm:$0xff] }
 0x419   :  { %2521 = vmatprep.subr.bf16.mxu1 %v2520_v21  ;;  %v2590_v21 = vpack.c.bf16 %v1342_v20, %v1341_v19 }
 0x41c   :  { %2523 = vmatpush3.bf16.msra.mxu1 %v2522_v32  ;;  %v1862_v32 = vld [vmem:[%s3852_s17 + $0x10] sm:$0xff] }
 0x41d   :  { %2525 = vmatprep.subr.bf16.mxu1 %v2524_v27  ;;  %v2599_v27 = vpack.c.bf16 %v1863_v52, %v1862_v32 }
 0x41f   :  { %2600 = vmatpush3.bf16.msra.mxu0 %v2599_v27 }
 0x420   :  { %2527 = vmatpush3.bf16.msra.mxu1 %v2526_v39  ;;  %2601 = vmatprep.subr.bf16.mxu0 %v2661_v56  ;;  %v1867_v39 = vld [vmem:[%s3852_s17 + $0x38] sm:$0xff] }
 0x421   :  { %2561 = vmatprep.subr.bf16.mxu1 %v2560_v40  ;;  %v2605_v40 = vpack.c.bf16 %v1867_v39, %v1866_v36 }
 0x423   :  { %1630 = vmatmul.mubr.f32.vlgmr.msra.gmra.mrb[16].mxu1 %v1483_v43  ;;  %2603 = vmatpush3.bf16.msra.mxu0 %v2602_v35 }
 0x424   :  { %2563 = vmatpush3.bf16.msra.mxu1 %v2562_v30  ;;  %1769 = vmatprep.mubr.f32.mxu1 %v1486_v47 }
 0x425   :  { %2565 = vmatprep.subr.bf16.mxu1 %v2564_v44  ;;  %2604 = vmatprep.subr.bf16.mxu0 %v2661_v56 }
 0x427   :  { %2606 = vmatpush3.bf16.msra.mxu0 %v2605_v40 }
 0x428   :  { %2567 = vmatpush3.bf16.msra.mxu1 %v2566_v50  ;;  %2607 = vmatprep.subr.bf16.mxu0 %v2661_v56 }
 0x429   :  { %2569 = vmatprep.subr.bf16.mxu1 %v2568_v51 }
 0x42c   :  { %2571 = vmatpush3.bf16.msra.mxu1 %v2570_v55  ;;  %v2072_v55 = vld [vmem:[%s3851_s16] ss:$0 sm:$0xff] }
 0x42d   :  { %2573 = vmatprep.subr.bf16.mxu1 %v2572_v38 }
 0x430   :  { %2575 = vmatpush3.bf16.msra.mxu1 %v2574_v34 }
 0x431   :  { %2577 = vmatprep.subr.bf16.mxu1 %v2576_v62  ;;  %v1951_v62 = vld [vmem:[%s3854_s19 + $0x10] sm:$0xff] }
 0x432   :  { %v2611_v0 = vpack.c.bf16 %v1952_v63, %v1951_v62 }
 0x434   :  { %2579 = vmatpush3.bf16.msra.mxu1 %v2578_v4  ;;  %v2614_v4 = vpack.c.bf16 %v1954_v2, %v1953_v1 }
 0x435   :  { %2581 = vmatprep.subr.bf16.mxu1 %v2580_v5  ;;  %v1956_v5 = vld [vmem:[%s3854_s19 + $0x38] sm:$0xff] }
 0x438   :  { %2583 = vmatpush3.bf16.msra.mxu1 %v2582_v9 }
 0x439   :  { %2585 = vmatprep.subr.bf16.mxu1 %v2584_v10 }
 0x43c   :  { %2587 = vmatpush3.bf16.msra.mxu1 %v2586_v17 }
 0x43d   :  { %2589 = vmatprep.subr.bf16.mxu1 %v2588_v18 }
 0x440   :  { %2591 = vmatpush3.bf16.msra.mxu1 %v2590_v21 }
 0x443   :  { %1770 = vmatmul.mubr.f32.vlgmr.msra.gmra.mrb[18].mxu1 %v1484_v23 }
 0x4d6   :  { %v2122_v22 = vpop.f32.mrb[14].mxu1  ;;  %v2192_v41 = vpop.f32.mrb[2].mxu0 }
 0x4d7   :  { %v2123_v37 = vpop.f32.mrb[15].mxu1  ;;  %v2193_v42 = vpop.f32.mrb[3].mxu0 }
 0x4d8   :  { %v2124_v30 = vadd.f32 %v2123_v37, %v2122_v22  ;;  %v2194_v43 = vadd.f32 %v2193_v42, %v2192_v41 }
 0x4da   :  { %v1562_v44 = vadd.f32 %v2124_v30, %v1431_v13 }
 0x4db   :  { %v1846_v45 = vpop.f32.mrb[4].mxu0 }
 0x4dc   :  { %v2284_v46 = vpop.f32.mrb[5].mxu0 }
 0x4f6   :  { %v2157_v47 = vpop.f32.mrb[16].mxu1 }
 0x4f7   :  { %v2158_v31 = vpop.f32.mrb[17].mxu1 }
 0x4f8   :  { %v2159_v49 = vadd.f32 %v2158_v31, %v2157_v47 }
 0x4fa   :  { %v1632_v50 = vadd.f32 %v2159_v49, %v1562_v44 }
 0x4fc   :  { %v1702_v51 = vadd.f32 %v2194_v43, %v1632_v50 }
 0x516   :  { %v2227_v53 = vpop.f32.mrb[18].mxu1 }
 0x517   :  { %v2228_v48 = vpop.f32.mrb[19].mxu1 }
 0x518   :  { %v2229_v28 = vadd.f32 %v2228_v48, %v2227_v53 }
 0x51a   :  { %v1772_v54 = vadd.f32 %v2229_v28, %v1702_v51 }
 0x51c   :  { %v1850_v38 = vadd.f32 %v1846_v45, %v1772_v54 }
 0x51e   :  { %v1858_v59 = vadd.f32 %v2072_v55, %v1850_v38 }
 0x520   :  { %v1859_v34 = vmax.f32 %v1858_v59, 0.0 }
 0x522   :  { %2302 = vmatmul.mubr.msk.f32.vlgmr.msra.gmra.mrb[6].mxu0 %vm559_vm3, %v1859_v34 }
 0x523   :  { %2609 = vmatpush3.bf16.msra.mxu0 %v2608_v61  ;;  %2320 = vmatprep.mubr.msk.f32.mxu0 %vm2665_vm2, %v2664_v3  ;;  %v1955_v3 = vld [vmem:[%s3854_s19 + $0x30] sm:$0xff]  ;;  %s2634_s19 = scalar_lea.vmem %s2046_s25, 32 }
 0x524   :  { %2610 = vmatprep.subr.bf16.mxu0 %v2661_v56  ;;  %v2617_v60 = vpack.c.bf16 %v1956_v5, %v1955_v3  ;;  %p2635_p0 = scmp.ne.s32.totalorder %s2046_s25, %s2634_s19  ;;  %p2640_p2 = scmp.lt.s32.totalorder %s2634_s19, %s2634_s19 }
 0x526   :  { %p2641_p3 = por %p2640_p2, %p2639_p1 }
 0x527   :  { %2612 = vmatpush3.bf16.msra.mxu0 %v2611_v0 }
 0x528   :  { %2613 = vmatprep.subr.bf16.mxu0 %v2661_v56  ;;  %p2642_p4 = pnand %p2641_p3, %p2635_p0 }
 0x52b   :  { %2615 = vmatpush3.bf16.msra.mxu0 %v2614_v4 }
 0x52c   :  { %2616 = vmatprep.subr.bf16.mxu0 %v2661_v56  ;;  %v2075_v56 = vld [vmem:[%s3855_s20] ss:$0 sm:$0xff] }
 0x52f   :  { %2618 = vmatpush3.bf16.msra.mxu0 %v2617_v60 }
 0x5f5   :  { %v1944_v7 = vpop.f32.mrb[6].mxu0 }
 0x5f6   :  { %v1945_v8 = vadd.f32 %v2073_v6, %v1944_v7  ;;  %v2303_v9 = vpop.f32.mrb[7].mxu0 }
 0x5f8   :  { %v1948_v10 = vmax.f32 %v1945_v8, 0.0 }
 0x5fa   :  { %2321 = vmatmul.mubr.msk.f32.vlgmr.msra.gmra.mrb[8].mxu0 %vm559_vm3, %v1948_v10 }
 0x6cd   :  { %v2033_v11 = vpop.f32.mrb[8].mxu0 }
 0x6ce   :  { %v2034_v12 = vadd.f32 %v2075_v56, %v2033_v11  ;;  %v2322_v13 = vpop.f32.mrb[9].mxu0 }
 0x6d0   :  { %2038 = vst.msk [vmem:[#allocation2] sm:$0x3] %vm2037_vm7, %v2034_v12 }
 0x6d1   :  { %2645 = shalt.err (!%p2642_p4)
}
 0x6d2   :  { %s2646_s3 = scalar_lea.hbm %s3856_s21, 32 }
 0x6d3   :  { %p2647_p5 = scmp.ne.s32.totalorder %s3856_s21, %s2646_s3  ;;  %p2650_p6 = scmp.lt.u32.totalorder %s2646_s3, %s3856_s21 }
 0x6d5   :  { %p2652_p7 = pnand %p2650_p6, %p2647_p5 }
 0x6d7   :  { %2655 = shalt.err (!%p2652_p7)
}
 0x6d8   :  { %2048 = dma.vmem_to_hbm [thread:$0]  %s2046_s25, 32, %s3856_s21, [#allocation3]  }
 0x6d9   :  { %2656 = dma.done.wait [#allocation3], 32  }
 0x6da   :  { %2657 = vsyncadd [#allocation3], 4294967264 }
 0x6db   :  { %2052 = vsyncpa [#allocation3], 1 }

</bundles_post_ra>
